<compile_context>
chip_gen: v7x
topology: tpu7x:2x2x1
jax: 0.10.0
libtpu: 0.0.40
codegen_flags: <defaults>
</compile_context>

<pallas_src>
import jax
import jax.numpy as jnp
from jax.experimental import pallas as pl
from jax.experimental.pallas import tpu as pltpu

# ----------------------------- model dimensions ------------------------------
B = 2            # batch
C_IN = 3         # image channels
IMG = 16         # image spatial size (H = W)
ENC_DIM = 32     # encoder_dim (stand-in for 2048)
ENC_SIZE = 4     # encoded image size -> num_pixels = ENC_SIZE**2
NUM_PIX = ENC_SIZE * ENC_SIZE
ATT_DIM = 32     # attention_dim
EMBED_DIM = 16   # embed_dim
DEC_DIM = 32     # decoder_dim
VOCAB = 50       # vocab_size
T = 8            # max caption length (so max decode steps = T - 1)
K = 3            # conv kernel size

# TPU-friendly padded sizes
B_PAD = 8            # f32 sublane minimum
VOCAB_PAD = 128      # lane-dense fc output
CONV_K_PAD = 32      # im2col contraction 27 -> 32


# ------------------------------ pallas helpers -------------------------------
def _const_spec(shape):
    n = len(shape)
    return pl.BlockSpec(shape, lambda t, n=n: (0,) * n)


def _time_spec(rows, cols):
    # (time, rows, cols) array, one (rows, cols) slab per grid step t
    return pl.BlockSpec((None, rows, cols), lambda t: (t, 0, 0))


def _pallas_full(kernel, out_shape, *inputs):
    """Run `kernel` once with every operand as a full-array VMEM block."""
    in_specs = [pl.BlockSpec(x.shape, lambda i, n=x.ndim: (0,) * n) for x in inputs]
    out_specs = pl.BlockSpec(out_shape.shape,
                             lambda i, n=len(out_shape.shape): (0,) * n)
    return pl.pallas_call(kernel, grid=(1,), in_specs=in_specs,
                          out_specs=out_specs, out_shape=out_shape)(*inputs)


# -------------------------------- kernels ------------------------------------
def encoder_kernel(x_ref, w_ref, b_ref, pool_ref, y_ref):
    # x: (B*H*W, CONV_K_PAD), w: (CONV_K_PAD, ENC_DIM), b: (1, ENC_DIM)
    # pool: (B*NUM_PIX, B*H*W)  — adaptive avg-pool as an MXU matmul
    y = jnp.dot(x_ref[...], w_ref[...], preferred_element_type=jnp.float32)
    y = jnp.maximum(y + b_ref[...], 0.0)
    y_ref[...] = jnp.dot(pool_ref[...], y, preferred_element_type=jnp.float32)


def fused_decoder_kernel(
        gemb_ref, enc_ref, dl_ref, pred_in_ref, alpha_in_ref,
        w_inith_ref, b_inith_ref, w_initc_ref, b_initc_ref,
        w_ea_ref, b_ea_ref, w_da_ref, b_da_ref,
        w_fa_ref, b_fa_ref, w_fb_ref, b_fb_ref,
        w_awe_ref, w_hh_ref, w_fc_ref, b_fc_ref,
        pred_ref, alpha_ref,
        h_sc, c_sc, att1_sc):
    t = pl.program_id(0)
    enc = enc_ref[...]                       # (B_PAD, P, E)

    # ----- t == 0: init_hidden_state + hoist time-invariant encoder_att(enc) -----
    @pl.when(t == 0)
    def _init():
        mean_enc = jnp.mean(enc, axis=1)     # (B_PAD, E)
        h_sc[...] = (jnp.dot(mean_enc, w_inith_ref[...],
                             preferred_element_type=jnp.float32) + b_inith_ref[...])
        c_sc[...] = (jnp.dot(mean_enc, w_initc_ref[...],
                             preferred_element_type=jnp.float32) + b_initc_ref[...])
        bp, p_, e_ = enc.shape
        a_ = w_ea_ref.shape[1]
        att1 = (jnp.dot(enc.reshape(bp * p_, e_), w_ea_ref[...],
                        preferred_element_type=jnp.float32) + b_ea_ref[...])
        att1_sc[...] = att1.reshape(bp, p_, a_)

    h = h_sc[...]                            # (B_PAD, H)
    c = c_sc[...]
    hdim = h.shape[1]

    # ----- Attention: full_att(relu(encoder_att(enc) + decoder_att(h))) -----
    att2 = (jnp.dot(h, w_da_ref[...], preferred_element_type=jnp.float32)
            + b_da_ref[...])                                  # (B_PAD, A)
    att = jnp.maximum(att1_sc[...] + att2[:, None, :], 0.0)   # (B_PAD, P, A)
    scores = jnp.sum(att * w_fa_ref[...][None, :, :], axis=-1) + b_fa_ref[...]

    # softmax over pixels
    scores = scores - jnp.max(scores, axis=1, keepdims=True)
    ex = jnp.exp(scores)
    alpha = ex / jnp.sum(ex, axis=1, keepdims=True)           # (B_PAD, P)

    awe = jnp.sum(enc * alpha[:, :, None], axis=1)            # (B_PAD, E)

    # ----- gating scalar: sigmoid(f_beta(h)) -----
    gate = jax.nn.sigmoid(jnp.dot(h, w_fb_ref[...],
                                  preferred_element_type=jnp.float32)
                          + b_fb_ref[...])                    # (B_PAD, E)
    awe = gate * awe

    # ----- LSTMCell([emb, awe], (h, c)); gate order i, f, g, o -----
    # emb @ W_ih_emb + b_ih + b_hh was hoisted out of the time loop (gemb_ref).
    gates = (gemb_ref[...]
             + jnp.dot(awe, w_awe_ref[...], preferred_element_type=jnp.float32)
             + jnp.dot(h, w_hh_ref[...], preferred_element_type=jnp.float32))
    i_g = jax.nn.sigmoid(gates[:, 0 * hdim:1 * hdim])
    f_g = jax.nn.sigmoid(gates[:, 1 * hdim:2 * hdim])
    g_g = jnp.tanh(gates[:, 2 * hdim:3 * hdim])
    o_g = jax.nn.sigmoid(gates[:, 3 * hdim:4 * hdim])
    c_new = f_g * c + i_g * g_g
    h_new = o_g * jnp.tanh(c_new)

    # ----- fc (dropout is identity in eval mode); VOCAB padded to 128 lanes -----
    preds = (jnp.dot(h_new, w_fc_ref[...], preferred_element_type=jnp.float32)
             + b_fc_ref[...])                                 # (B_PAD, VOCAB_PAD)

    # ----- per-row mask: t < decode_length (batch_size_t truncation) -----
    mask = dl_ref[...] > t                                    # (B_PAD, 1) bool
    h_sc[...] = jnp.where(mask, h_new, h)
    c_sc[...] = jnp.where(mask, c_new, c)
    pred_ref[...] = jnp.where(mask, preds, pred_in_ref[...])
    alpha_ref[...] = jnp.where(mask, alpha, alpha_in_ref[...])


# ------------------------------ forward (glue) --------------------------------
def encoder_forward(params, image):
    # image: NCHW (B, C_IN, H, W)
    b, cin, hh, ww = image.shape
    xpad = jnp.pad(image, ((0, 0), (0, 0), (1, 1), (1, 1)))
    patches = [xpad[:, :, ky:ky + hh, kx:kx + ww]
               for ky in range(K) for kx in range(K)]
    p = jnp.stack(patches, axis=2)                            # (B, C, K*K, H, W)
    p = p.transpose(0, 3, 4, 1, 2).reshape(b * hh * ww, cin * K * K)
    kpad = CONV_K_PAD - cin * K * K
    p = jnp.pad(p, ((0, 0), (0, kpad)))
    w = jnp.pad(params["w_conv"], ((0, kpad), (0, 0)))

    # adaptive avg-pool (H,W) -> (ENC_SIZE, ENC_SIZE) expressed as a pooling matrix
    s = hh // ENC_SIZE
    ph = jnp.repeat(jnp.arange(ENC_SIZE), s)                  # (H,)
    pool_pix = (ph[:, None] * ENC_SIZE + ph[None, :]).reshape(-1)   # (H*W,)
    pool_single = (jnp.arange(NUM_PIX)[:, None] == pool_pix[None, :]
                   ).astype(jnp.float32) / float(s * s)       # (P, H*W)
    pool_mat = jnp.kron(jnp.eye(b, dtype=jnp.float32), pool_single)  # (B*P, B*H*W)

    enc = _pallas_full(
        encoder_kernel,
        jax.ShapeDtypeStruct((b * NUM_PIX, ENC_DIM), jnp.float32),
        p, w, params["b_conv"], pool_mat)
    # channels-last, flattened pixels: (B, num_pixels, encoder_dim)
    return enc.reshape(b, NUM_PIX, ENC_DIM)


@jax.jit
def net_forward(params, image, encoded_captions, caption_lengths, predictions, alphas):
    # ---------------- Encoder ----------------
    enc_out = encoder_forward(params, image)                  # (B, P, E)
    b = enc_out.shape[0]
    n_steps = T - 1

    # ---------------- DecoderWithAttention ----------------
    cap_len = caption_lengths[:, 0]
    sort_ind = jnp.argsort(-cap_len)                          # descending by length
    cap_len_sorted = cap_len[sort_ind]
    enc_out_s = enc_out[sort_ind]
    caps = encoded_captions[sort_ind]
    decode_lengths = cap_len_sorted - 1                       # (B,)

    # embeddings for input tokens 0..T-2, time-major
    emb = params["embedding"][caps]                           # (B, T, embed)
    emb_seq = jnp.transpose(emb[:, :n_steps, :], (1, 0, 2))   # (T-1, B, embed)

    # pad batch to B_PAD, make outputs lane-dense (VOCAB -> 128), time-major buffers
    pad_b = B_PAD - b
    enc_p = jnp.pad(enc_out_s, ((0, pad_b), (0, 0), (0, 0)))  # (B_PAD, P, E)
    emb_p = jnp.pad(emb_seq, ((0, 0), (0, pad_b), (0, 0)))    # (T-1, B_PAD, embed)
    dl_p = jnp.pad(decode_lengths, (0, pad_b)).astype(jnp.int32)[:, None]  # (B_PAD,1)

    pred_in = jnp.transpose(predictions, (1, 0, 2))           # (T-1, B, V)
    pred_in = jnp.pad(pred_in, ((0, 0), (0, pad_b), (0, VOCAB_PAD - VOCAB)))
    alpha_in = jnp.transpose(alphas, (1, 0, 2))               # (T-1, B, P)
    alpha_in = jnp.pad(alpha_in, ((0, 0), (0, pad_b), (0, 0)))

    # hoist the embedding gate projection (+ both LSTM biases) out of the time loop
    gemb = (jnp.einsum("tbe,eg->tbg", emb_p, params["w_ih_emb"])
            + params["b_ih"] + params["b_hh"])                # (T-1, B_PAD, 4H)

    # pad fc to 128 lanes (padded lanes are zero and sliced off below)
    w_fc_p = jnp.pad(params["w_fc"], ((0, 0), (0, VOCAB_PAD - VOCAB)))
    b_fc_p = jnp.pad(params["b_fc"], ((0, 0), (0, VOCAB_PAD - VOCAB)))

    grid_spec = pltpu.PrefetchScalarGridSpec(
        num_scalar_prefetch=0,
        grid=(n_steps,),
        in_specs=[
            _time_spec(B_PAD, 4 * DEC_DIM),                   # gemb
            _const_spec((B_PAD, NUM_PIX, ENC_DIM)),           # enc_out
            _const_spec((B_PAD, 1)),                          # decode_lengths
            _time_spec(B_PAD, VOCAB_PAD),                     # predictions (in)
            _time_spec(B_PAD, NUM_PIX),                       # alphas (in)
            _const_spec((ENC_DIM, DEC_DIM)),                  # w_init_h
            _const_spec((1, DEC_DIM)),                        # b_init_h
            _const_spec((ENC_DIM, DEC_DIM)),                  # w_init_c
            _const_spec((1, DEC_DIM)),                        # b_init_c
            _const_spec((ENC_DIM, ATT_DIM)),                  # w_enc_att
            _const_spec((1, ATT_DIM)),                        # b_enc_att
            _const_spec((DEC_DIM, ATT_DIM)),                  # w_dec_att
            _const_spec((1, ATT_DIM)),                        # b_dec_att
            _const_spec((1, ATT_DIM)),                        # w_full_att
            _const_spec((1, 1)),                              # b_full_att
            _const_spec((DEC_DIM, ENC_DIM)),                  # w_f_beta
            _const_spec((1, ENC_DIM)),                        # b_f_beta
            _const_spec((ENC_DIM, 4 * DEC_DIM)),              # w_ih_awe
            _const_spec((DEC_DIM, 4 * DEC_DIM)),              # w_hh
            _const_spec((DEC_DIM, VOCAB_PAD)),                # w_fc (padded)
            _const_spec((1, VOCAB_PAD)),                      # b_fc (padded)
        ],
        out_specs=(
            _time_spec(B_PAD, VOCAB_PAD),                     # predictions (out)
            _time_spec(B_PAD, NUM_PIX),                       # alphas (out)
        ),
        scratch_shapes=[
            pltpu.VMEM((B_PAD, DEC_DIM), jnp.float32),        # h
            pltpu.VMEM((B_PAD, DEC_DIM), jnp.float32),        # c
            pltpu.VMEM((B_PAD, NUM_PIX, ATT_DIM), jnp.float32),  # encoder_att(enc)
        ],
    )

    pred_out, alpha_out = pl.pallas_call(
        fused_decoder_kernel,
        grid_spec=grid_spec,
        out_shape=(jax.ShapeDtypeStruct((n_steps, B_PAD, VOCAB_PAD), jnp.float32),
                   jax.ShapeDtypeStruct((n_steps, B_PAD, NUM_PIX), jnp.float32)),
        compiler_params=pltpu.CompilerParams(
            dimension_semantics=("arbitrary",)),              # time carries h/c
    )(gemb, enc_p, dl_p, pred_in, alpha_in,
      params["w_init_h"], params["b_init_h"], params["w_init_c"], params["b_init_c"],
      params["w_enc_att"], params["b_enc_att"], params["w_dec_att"], params["b_dec_att"],
      params["w_full_att"], params["b_full_att"], params["w_f_beta"], params["b_f_beta"],
      params["w_ih_awe"], params["w_hh"], w_fc_p, b_fc_p)

    # strip padding, back to batch-major layout
    predictions_out = jnp.transpose(pred_out[:, :b, :VOCAB], (1, 0, 2))
    alphas_out = jnp.transpose(alpha_out[:, :b, :], (1, 0, 2))

    return predictions_out, caps, decode_lengths, alphas_out, sort_ind


# ------------------------------ parameter init --------------------------------
def init_params(key):
    ks = jax.random.split(key, 24)

    def u(k, shape, scale=0.1):
        return jax.random.uniform(k, shape, jnp.float32, -scale, scale)

    # All Linear weights stored pre-transposed: (in_features, out_features).
    return {
        "w_conv":     u(ks[0],  (C_IN * K * K, ENC_DIM)),
        "b_conv":     u(ks[1],  (1, ENC_DIM)),
        "embedding":  u(ks[2],  (VOCAB, EMBED_DIM)),
        "w_enc_att":  u(ks[3],  (ENC_DIM, ATT_DIM)),
        "b_enc_att":  u(ks[4],  (1, ATT_DIM)),
        "w_dec_att":  u(ks[5],  (DEC_DIM, ATT_DIM)),
        "b_dec_att":  u(ks[6],  (1, ATT_DIM)),
        "w_full_att": u(ks[7],  (1, ATT_DIM)),      # Linear(att_dim, 1) weight
        "b_full_att": u(ks[8],  (1, 1)),
        "w_init_h":   u(ks[9],  (ENC_DIM, DEC_DIM)),
        "b_init_h":   u(ks[10], (1, DEC_DIM)),
        "w_init_c":   u(ks[11], (ENC_DIM, DEC_DIM)),
        "b_init_c":   u(ks[12], (1, DEC_DIM)),
        "w_f_beta":   u(ks[13], (DEC_DIM, ENC_DIM)),
        "b_f_beta":   u(ks[14], (1, ENC_DIM)),
        "w_ih_emb":   u(ks[15], (EMBED_DIM, 4 * DEC_DIM)),
        "w_ih_awe":   u(ks[16], (ENC_DIM, 4 * DEC_DIM)),
        "b_ih":       u(ks[17], (1, 4 * DEC_DIM)),
        "w_hh":       u(ks[18], (DEC_DIM, 4 * DEC_DIM)),
        "b_hh":       u(ks[19], (1, 4 * DEC_DIM)),
        "w_fc":       u(ks[20], (DEC_DIM, VOCAB)),
        "b_fc":       u(ks[21], (1, VOCAB)),
    }


# ----------------------------------- main --------------------------------------
if __name__ == "__main__":
    key = jax.random.PRNGKey(0)
    k_img, k_cap = jax.random.split(key)

    image = jax.random.normal(k_img, (B, C_IN, IMG, IMG), jnp.float32)       # NCHW
    encoded_captions = jax.random.randint(k_cap, (B, T), 0, VOCAB, jnp.int32)
    caption_lengths = jnp.array([[T - 3], [T]], jnp.int32)                   # (B, 1)
    predictions = jnp.zeros((B, T - 1, VOCAB), jnp.float32)
    alphas = jnp.zeros((B, T - 1, NUM_PIX), jnp.float32)

    params = init_params(jax.random.PRNGKey(42))

    out = net_forward(params, image, encoded_captions, caption_lengths,
                      predictions, alphas)
    jax.block_until_ready(out)
    print("KERNEL_OK")
</pallas_src>

<mosaic_0001>
module attributes {stable_mosaic.version = 11 : i64} {
  func.func @encoder_kernel(%arg0: i32, %arg1: memref<512x32xf32, #tpu.memory_space<vmem>>, %arg2: memref<32x32xf32, #tpu.memory_space<vmem>>, %arg3: memref<1x32xf32, #tpu.memory_space<vmem>>, %arg4: memref<32x512xf32, #tpu.memory_space<vmem>>, %arg5: memref<32x32xf32, #tpu.memory_space<vmem>>) attributes {dimension_semantics = [#tpu.dimension_semantics<arbitrary>], iteration_bounds = array<i64: 1>, scalar_prefetch = 0 : i64, scratch_operands = 0 : i64, tpu.core_type = #tpu.core_type<tc>, window_params = [{pipeline_mode = #tpu.pipeline_mode<synchronous>, transform_indices = @transform_0, window_bounds = array<i64: 512, 32>}, {pipeline_mode = #tpu.pipeline_mode<synchronous>, transform_indices = @transform_1, window_bounds = array<i64: 32, 32>}, {pipeline_mode = #tpu.pipeline_mode<synchronous>, transform_indices = @transform_2, window_bounds = array<i64: 1, 32>}, {pipeline_mode = #tpu.pipeline_mode<synchronous>, transform_indices = @transform_3, window_bounds = array<i64: 32, 512>}, {pipeline_mode = #tpu.pipeline_mode<synchronous>, transform_indices = @transform_4, window_bounds = array<i64: 32, 32>}]} {
    %c0 = arith.constant 0 : index
    %c0_0 = arith.constant 0 : index
    %0 = vector.load %arg1[%c0, %c0_0] : memref<512x32xf32, #tpu.memory_space<vmem>>, vector<512x32xf32>
    %c0_1 = arith.constant 0 : index
    %c0_2 = arith.constant 0 : index
    %1 = vector.load %arg2[%c0_1, %c0_2] : memref<32x32xf32, #tpu.memory_space<vmem>>, vector<32x32xf32>
    %cst = arith.constant dense<0.000000e+00> : vector<512x32xf32>
    %2 = tpu.matmul %0, %1, %cst {dimension_numbers = #tpu.dot_dimension_numbers<[1], [0], [0], [1], [0, 0, 1, 1], [], []>} : vector<512x32xf32>, vector<32x32xf32>, vector<512x32xf32> -> vector<512x32xf32>
    %c0_3 = arith.constant 0 : index
    %c0_4 = arith.constant 0 : index
    %3 = vector.load %arg3[%c0_3, %c0_4] : memref<1x32xf32, #tpu.memory_space<vmem>>, vector<1x32xf32>
    %4 = vector.broadcast %3 : vector<1x32xf32> to vector<512x32xf32>
    %5 = arith.addf %2, %4 : vector<512x32xf32>
    %cst_5 = arith.constant 0.000000e+00 : f32
    %6 = vector.broadcast %cst_5 : f32 to vector<512x32xf32>
    %7 = arith.maximumf %5, %6 : vector<512x32xf32>
    %c0_6 = arith.constant 0 : index
    %c0_7 = arith.constant 0 : index
    %8 = vector.load %arg4[%c0_6, %c0_7] : memref<32x512xf32, #tpu.memory_space<vmem>>, vector<32x512xf32>
    %cst_8 = arith.constant dense<0.000000e+00> : vector<32x32xf32>
    %9 = tpu.matmul %8, %7, %cst_8 {dimension_numbers = #tpu.dot_dimension_numbers<[1], [0], [0], [1], [0, 0, 1, 1], [], []>} : vector<32x512xf32>, vector<512x32xf32>, vector<32x32xf32> -> vector<32x32xf32>
    %c0_9 = arith.constant 0 : index
    %c0_10 = arith.constant 0 : index
    %10 = vector.load %arg5[%c0_9, %c0_10] : memref<32x32xf32, #tpu.memory_space<vmem>>, vector<32x32xf32>
    tpu.vector_store %arg5[%c0_9, %c0_10], %9 {strides = array<i32>} : memref<32x32xf32, #tpu.memory_space<vmem>>, vector<32x32xf32>,
    return
  }
  func.func @transform_0(%arg0: i32) -> (i32, i32) {
    %c0_i32 = arith.constant 0 : i32
    %c0_i32_0 = arith.constant 0 : i32
    %c0_i32_1 = arith.constant 0 : i32
    return %c0_i32, %c0_i32_0 : i32, i32
  }
  func.func @transform_1(%arg0: i32) -> (i32, i32) {
    %c0_i32 = arith.constant 0 : i32
    %c0_i32_0 = arith.constant 0 : i32
    %c0_i32_1 = arith.constant 0 : i32
    return %c0_i32, %c0_i32_0 : i32, i32
  }
  func.func @transform_2(%arg0: i32) -> (i32, i32) {
    %c0_i32 = arith.constant 0 : i32
    %c0_i32_0 = arith.constant 0 : i32
    %c0_i32_1 = arith.constant 0 : i32
    return %c0_i32, %c0_i32_0 : i32, i32
  }
  func.func @transform_3(%arg0: i32) -> (i32, i32) {
    %c0_i32 = arith.constant 0 : i32
    %c0_i32_0 = arith.constant 0 : i32
    %c0_i32_1 = arith.constant 0 : i32
    return %c0_i32, %c0_i32_0 : i32, i32
  }
  func.func @transform_4(%arg0: i32) -> (i32, i32) {
    %c0_i32 = arith.constant 0 : i32
    %c0_i32_0 = arith.constant 0 : i32
    %c0_i32_1 = arith.constant 0 : i32
    return %c0_i32, %c0_i32_0 : i32, i32
  }
}

module attributes {stable_mosaic.version = 11 : i64} {
  func.func @fused_decoder_kernel(%arg0: i32, %arg1: memref<1x8x128xf32, #tpu.memory_space<vmem>>, %arg2: memref<8x16x32xf32, #tpu.memory_space<vmem>>, %arg3: memref<8x1xi32, #tpu.memory_space<vmem>>, %arg4: memref<1x8x128xf32, #tpu.memory_space<vmem>>, %arg5: memref<1x8x16xf32, #tpu.memory_space<vmem>>, %arg6: memref<32x32xf32, #tpu.memory_space<vmem>>, %arg7: memref<1x32xf32, #tpu.memory_space<vmem>>, %arg8: memref<32x32xf32, #tpu.memory_space<vmem>>, %arg9: memref<1x32xf32, #tpu.memory_space<vmem>>, %arg10: memref<32x32xf32, #tpu.memory_space<vmem>>, %arg11: memref<1x32xf32, #tpu.memory_space<vmem>>, %arg12: memref<32x32xf32, #tpu.memory_space<vmem>>, %arg13: memref<1x32xf32, #tpu.memory_space<vmem>>, %arg14: memref<1x32xf32, #tpu.memory_space<vmem>>, %arg15: memref<1x1xf32, #tpu.memory_space<vmem>>, %arg16: memref<32x32xf32, #tpu.memory_space<vmem>>, %arg17: memref<1x32xf32, #tpu.memory_space<vmem>>, %arg18: memref<32x128xf32, #tpu.memory_space<vmem>>, %arg19: memref<32x128xf32, #tpu.memory_space<vmem>>, %arg20: memref<32x128xf32, #tpu.memory_space<vmem>>, %arg21: memref<1x128xf32, #tpu.memory_space<vmem>>, %arg22: memref<1x8x128xf32, #tpu.memory_space<vmem>>, %arg23: memref<1x8x16xf32, #tpu.memory_space<vmem>>, %arg24: memref<8x32xf32, #tpu.memory_space<vmem>>, %arg25: memref<8x32xf32, #tpu.memory_space<vmem>>, %arg26: memref<8x16x32xf32, #tpu.memory_space<vmem>>) attributes {dimension_semantics = [#tpu.dimension_semantics<arbitrary>], iteration_bounds = array<i64: 7>, scalar_prefetch = 0 : i64, scratch_operands = 3 : i64, tpu.core_type = #tpu.core_type<tc>, window_params = [{transform_indices = @transform_0, window_bounds = array<i64: 1, 8, 128>}, {pipeline_mode = #tpu.pipeline_mode<synchronous>, transform_indices = @transform_1, window_bounds = array<i64: 8, 16, 32>}, {pipeline_mode = #tpu.pipeline_mode<synchronous>, transform_indices = @transform_2, window_bounds = array<i64: 8, 1>}, {transform_indices = @transform_3, window_bounds = array<i64: 1, 8, 128>}, {transform_indices = @transform_4, window_bounds = array<i64: 1, 8, 16>}, {pipeline_mode = #tpu.pipeline_mode<synchronous>, transform_indices = @transform_5, window_bounds = array<i64: 32, 32>}, {pipeline_mode = #tpu.pipeline_mode<synchronous>, transform_indices = @transform_6, window_bounds = array<i64: 1, 32>}, {pipeline_mode = #tpu.pipeline_mode<synchronous>, transform_indices = @transform_7, window_bounds = array<i64: 32, 32>}, {pipeline_mode = #tpu.pipeline_mode<synchronous>, transform_indices = @transform_8, window_bounds = array<i64: 1, 32>}, {pipeline_mode = #tpu.pipeline_mode<synchronous>, transform_indices = @transform_9, window_bounds = array<i64: 32, 32>}, {pipeline_mode = #tpu.pipeline_mode<synchronous>, transform_indices = @transform_10, window_bounds = array<i64: 1, 32>}, {pipeline_mode = #tpu.pipeline_mode<synchronous>, transform_indices = @transform_11, window_bounds = array<i64: 32, 32>}, {pipeline_mode = #tpu.pipeline_mode<synchronous>, transform_indices = @transform_12, window_bounds = array<i64: 1, 32>}, {pipeline_mode = #tpu.pipeline_mode<synchronous>, transform_indices = @transform_13, window_bounds = array<i64: 1, 32>}, {pipeline_mode = #tpu.pipeline_mode<synchronous>, transform_indices = @transform_14, window_bounds = array<i64: 1, 1>}, {pipeline_mode = #tpu.pipeline_mode<synchronous>, transform_indices = @transform_15, window_bounds = array<i64: 32, 32>}, {pipeline_mode = #tpu.pipeline_mode<synchronous>, transform_indices = @transform_16, window_bounds = array<i64: 1, 32>}, {pipeline_mode = #tpu.pipeline_mode<synchronous>, transform_indices = @transform_17, window_bounds = array<i64: 32, 128>}, {pipeline_mode = #tpu.pipeline_mode<synchronous>, transform_indices = @transform_18, window_bounds = array<i64: 32, 128>}, {pipeline_mode = #tpu.pipeline_mode<synchronous>, transform_indices = @transform_19, window_bounds = array<i64: 32, 128>}, {pipeline_mode = #tpu.pipeline_mode<synchronous>, transform_indices = @transform_20, window_bounds = array<i64: 1, 128>}, {transform_indices = @transform_21, window_bounds = array<i64: 1, 8, 128>}, {transform_indices = @transform_22, window_bounds = array<i64: 1, 8, 16>}]} {
    %c0 = arith.constant 0 : index
    %c0_0 = arith.constant 0 : index
    %c0_1 = arith.constant 0 : index
    %0 = vector.load %arg2[%c0, %c0_0, %c0_1] : memref<8x16x32xf32, #tpu.memory_space<vmem>>, vector<8x16x32xf32>
    %c0_i32 = arith.constant 0 : i32
    %1 = arith.cmpi eq, %arg0, %c0_i32 : i32
    %2 = arith.extui %1 : i1 to i32
    %c0_i32_2 = arith.constant 0 : i32
    %3 = arith.cmpi ne, %2, %c0_i32_2 : i32
    scf.if %3 {
      %cst_64 = arith.constant dense<0.000000e+00> : vector<8x32xf32>
      %114 = vector.multi_reduction <add>, %0, %cst_64 [1] : vector<8x16x32xf32> to vector<8x32xf32>
      %cst_65 = arith.constant 1.600000e+01 : f32
      %115 = vector.broadcast %cst_65 : f32 to vector<8x32xf32>
      %116 = arith.divf %114, %115 : vector<8x32xf32>
      %c0_66 = arith.constant 0 : index
      %c0_67 = arith.constant 0 : index
      %117 = vector.load %arg6[%c0_66, %c0_67] : memref<32x32xf32, #tpu.memory_space<vmem>>, vector<32x32xf32>
      %cst_68 = arith.constant dense<0.000000e+00> : vector<8x32xf32>
      %118 = tpu.matmul %116, %117, %cst_68 {dimension_numbers = #tpu.dot_dimension_numbers<[1], [0], [0], [1], [0, 0, 1, 1], [], []>} : vector<8x32xf32>, vector<32x32xf32>, vector<8x32xf32> -> vector<8x32xf32>
      %c0_69 = arith.constant 0 : index
      %c0_70 = arith.constant 0 : index
      %119 = vector.load %arg7[%c0_69, %c0_70] : memref<1x32xf32, #tpu.memory_space<vmem>>, vector<1x32xf32>
      %120 = vector.broadcast %119 : vector<1x32xf32> to vector<8x32xf32>
      %121 = arith.addf %118, %120 : vector<8x32xf32>
      %c0_71 = arith.constant 0 : index
      %c0_72 = arith.constant 0 : index
      %122 = vector.load %arg24[%c0_71, %c0_72] : memref<8x32xf32, #tpu.memory_space<vmem>>, vector<8x32xf32>
      tpu.vector_store %arg24[%c0_71, %c0_72], %121 {strides = array<i32>} : memref<8x32xf32, #tpu.memory_space<vmem>>, vector<8x32xf32>,
      %c0_73 = arith.constant 0 : index
      %c0_74 = arith.constant 0 : index
      %123 = vector.load %arg8[%c0_73, %c0_74] : memref<32x32xf32, #tpu.memory_space<vmem>>, vector<32x32xf32>
      %cst_75 = arith.constant dense<0.000000e+00> : vector<8x32xf32>
      %124 = tpu.matmul %116, %123, %cst_75 {dimension_numbers = #tpu.dot_dimension_numbers<[1], [0], [0], [1], [0, 0, 1, 1], [], []>} : vector<8x32xf32>, vector<32x32xf32>, vector<8x32xf32> -> vector<8x32xf32>
      %c0_76 = arith.constant 0 : index
      %c0_77 = arith.constant 0 : index
      %125 = vector.load %arg9[%c0_76, %c0_77] : memref<1x32xf32, #tpu.memory_space<vmem>>, vector<1x32xf32>
      %126 = vector.broadcast %125 : vector<1x32xf32> to vector<8x32xf32>
      %127 = arith.addf %124, %126 : vector<8x32xf32>
      %c0_78 = arith.constant 0 : index
      %c0_79 = arith.constant 0 : index
      %128 = vector.load %arg25[%c0_78, %c0_79] : memref<8x32xf32, #tpu.memory_space<vmem>>, vector<8x32xf32>
      tpu.vector_store %arg25[%c0_78, %c0_79], %127 {strides = array<i32>} : memref<8x32xf32, #tpu.memory_space<vmem>>, vector<8x32xf32>,
      %129 = vector.shape_cast %0 : vector<8x16x32xf32> to vector<128x32xf32>
      %c0_80 = arith.constant 0 : index
      %c0_81 = arith.constant 0 : index
      %130 = vector.load %arg10[%c0_80, %c0_81] : memref<32x32xf32, #tpu.memory_space<vmem>>, vector<32x32xf32>
      %cst_82 = arith.constant dense<0.000000e+00> : vector<128x32xf32>
      %131 = tpu.matmul %129, %130, %cst_82 {dimension_numbers = #tpu.dot_dimension_numbers<[1], [0], [0], [1], [0, 0, 1, 1], [], []>} : vector<128x32xf32>, vector<32x32xf32>, vector<128x32xf32> -> vector<128x32xf32>
      %c0_83 = arith.constant 0 : index
      %c0_84 = arith.constant 0 : index
      %132 = vector.load %arg11[%c0_83, %c0_84] : memref<1x32xf32, #tpu.memory_space<vmem>>, vector<1x32xf32>
      %133 = vector.broadcast %132 : vector<1x32xf32> to vector<128x32xf32>
      %134 = arith.addf %131, %133 : vector<128x32xf32>
      %135 = vector.shape_cast %134 : vector<128x32xf32> to vector<8x16x32xf32>
      %c0_85 = arith.constant 0 : index
      %c0_86 = arith.constant 0 : index
      %c0_87 = arith.constant 0 : index
      %136 = vector.load %arg26[%c0_85, %c0_86, %c0_87] : memref<8x16x32xf32, #tpu.memory_space<vmem>>, vector<8x16x32xf32>
      tpu.vector_store %arg26[%c0_85, %c0_86, %c0_87], %135 {strides = array<i32>} : memref<8x16x32xf32, #tpu.memory_space<vmem>>, vector<8x16x32xf32>,
    } else {
    }
    %c0_3 = arith.constant 0 : index
    %c0_4 = arith.constant 0 : index
    %4 = vector.load %arg24[%c0_3, %c0_4] : memref<8x32xf32, #tpu.memory_space<vmem>>, vector<8x32xf32>
    %c0_5 = arith.constant 0 : index
    %c0_6 = arith.constant 0 : index
    %5 = vector.load %arg25[%c0_5, %c0_6] : memref<8x32xf32, #tpu.memory_space<vmem>>, vector<8x32xf32>
    %c0_7 = arith.constant 0 : index
    %c0_8 = arith.constant 0 : index
    %6 = vector.load %arg12[%c0_7, %c0_8] : memref<32x32xf32, #tpu.memory_space<vmem>>, vector<32x32xf32>
    %cst = arith.constant dense<0.000000e+00> : vector<8x32xf32>
    %7 = tpu.matmul %4, %6, %cst {dimension_numbers = #tpu.dot_dimension_numbers<[1], [0], [0], [1], [0, 0, 1, 1], [], []>} : vector<8x32xf32>, vector<32x32xf32>, vector<8x32xf32> -> vector<8x32xf32>
    %c0_9 = arith.constant 0 : index
    %c0_10 = arith.constant 0 : index
    %8 = vector.load %arg13[%c0_9, %c0_10] : memref<1x32xf32, #tpu.memory_space<vmem>>, vector<1x32xf32>
    %9 = vector.broadcast %8 : vector<1x32xf32> to vector<8x32xf32>
    %10 = arith.addf %7, %9 : vector<8x32xf32>
    %c0_11 = arith.constant 0 : index
    %c0_12 = arith.constant 0 : index
    %c0_13 = arith.constant 0 : index
    %11 = vector.load %arg26[%c0_11, %c0_12, %c0_13] : memref<8x16x32xf32, #tpu.memory_space<vmem>>, vector<8x16x32xf32>
    %12 = vector.shape_cast %10 : vector<8x32xf32> to vector<8x1x32xf32>
    %13 = vector.broadcast %12 : vector<8x1x32xf32> to vector<8x16x32xf32>
    %14 = arith.addf %11, %13 : vector<8x16x32xf32>
    %cst_14 = arith.constant 0.000000e+00 : f32
    %15 = vector.broadcast %cst_14 : f32 to vector<8x16x32xf32>
    %16 = arith.maximumf %14, %15 : vector<8x16x32xf32>
    %c0_15 = arith.constant 0 : index
    %c0_16 = arith.constant 0 : index
    %17 = vector.load %arg14[%c0_15, %c0_16] : memref<1x32xf32, #tpu.memory_space<vmem>>, vector<1x32xf32>
    %18 = vector.shape_cast %17 : vector<1x32xf32> to vector<1x1x32xf32>
    %19 = vector.broadcast %18 : vector<1x1x32xf32> to vector<8x16x32xf32>
    %20 = arith.mulf %16, %19 : vector<8x16x32xf32>
    %cst_17 = arith.constant dense<0.000000e+00> : vector<8x16xf32>
    %21 = vector.multi_reduction <add>, %20, %cst_17 [2] : vector<8x16x32xf32> to vector<8x16xf32>
    %c0_18 = arith.constant 0 : index
    %c0_19 = arith.constant 0 : index
    %22 = vector.load %arg15[%c0_18, %c0_19] : memref<1x1xf32, #tpu.memory_space<vmem>>, vector<1x1xf32>
    %23 = vector.broadcast %22 : vector<1x1xf32> to vector<8x16xf32>
    %24 = arith.addf %21, %23 : vector<8x16xf32>
    %cst_20 = arith.constant dense<0xFF800000> : vector<8xf32>
    %25 = vector.multi_reduction <maximumf>, %24, %cst_20 [1] : vector<8x16xf32> to vector<8xf32>
    %26 = vector.shape_cast %25 : vector<8xf32> to vector<8x1xf32>
    %27 = vector.broadcast %26 : vector<8x1xf32> to vector<8x16xf32>
    %28 = arith.subf %24, %27 : vector<8x16xf32>
    %29 = math.exp %28 : vector<8x16xf32>
    %cst_21 = arith.constant dense<0.000000e+00> : vector<8xf32>
    %30 = vector.multi_reduction <add>, %29, %cst_21 [1] : vector<8x16xf32> to vector<8xf32>
    %31 = vector.shape_cast %30 : vector<8xf32> to vector<8x1xf32>
    %32 = vector.broadcast %31 : vector<8x1xf32> to vector<8x16xf32>
    %33 = arith.divf %29, %32 : vector<8x16xf32>
    %34 = vector.shape_cast %33 : vector<8x16xf32> to vector<8x16x1xf32>
    %35 = vector.broadcast %34 : vector<8x16x1xf32> to vector<8x16x32xf32>
    %36 = arith.mulf %0, %35 : vector<8x16x32xf32>
    %cst_22 = arith.constant dense<0.000000e+00> : vector<8x32xf32>
    %37 = vector.multi_reduction <add>, %36, %cst_22 [1] : vector<8x16x32xf32> to vector<8x32xf32>
    %c0_23 = arith.constant 0 : index
    %c0_24 = arith.constant 0 : index
    %38 = vector.load %arg16[%c0_23, %c0_24] : memref<32x32xf32, #tpu.memory_space<vmem>>, vector<32x32xf32>
    %cst_25 = arith.constant dense<0.000000e+00> : vector<8x32xf32>
    %39 = tpu.matmul %4, %38, %cst_25 {dimension_numbers = #tpu.dot_dimension_numbers<[1], [0], [0], [1], [0, 0, 1, 1], [], []>} : vector<8x32xf32>, vector<32x32xf32>, vector<8x32xf32> -> vector<8x32xf32>
    %c0_26 = arith.constant 0 : index
    %c0_27 = arith.constant 0 : index
    %40 = vector.load %arg17[%c0_26, %c0_27] : memref<1x32xf32, #tpu.memory_space<vmem>>, vector<1x32xf32>
    %41 = vector.broadcast %40 : vector<1x32xf32> to vector<8x32xf32>
    %42 = arith.addf %39, %41 : vector<8x32xf32>
    %43 = arith.negf %42 : vector<8x32xf32>
    %44 = math.exp %43 : vector<8x32xf32>
    %cst_28 = arith.constant 1.000000e+00 : f32
    %45 = vector.broadcast %cst_28 : f32 to vector<8x32xf32>
    %46 = arith.addf %45, %44 : vector<8x32xf32>
    %47 = arith.divf %45, %46 : vector<8x32xf32>
    %48 = arith.mulf %47, %37 : vector<8x32xf32>
    %c0_29 = arith.constant 0 : index
    %c0_30 = arith.constant 0 : index
    %c0_31 = arith.constant 0 : index
    %49 = vector.load %arg1[%c0_29, %c0_30, %c0_31] : memref<1x8x128xf32, #tpu.memory_space<vmem>>, vector<1x8x128xf32>
    %50 = vector.shape_cast %49 : vector<1x8x128xf32> to vector<8x128xf32>
    %c0_32 = arith.constant 0 : index
    %c0_33 = arith.constant 0 : index
    %51 = vector.load %arg18[%c0_32, %c0_33] : memref<32x128xf32, #tpu.memory_space<vmem>>, vector<32x128xf32>
    %cst_34 = arith.constant dense<0.000000e+00> : vector<8x128xf32>
    %52 = tpu.matmul %48, %51, %cst_34 {dimension_numbers = #tpu.dot_dimension_numbers<[1], [0], [0], [1], [0, 0, 1, 1], [], []>} : vector<8x32xf32>, vector<32x128xf32>, vector<8x128xf32> -> vector<8x128xf32>
    %53 = arith.addf %50, %52 : vector<8x128xf32>
    %c0_35 = arith.constant 0 : index
    %c0_36 = arith.constant 0 : index
    %54 = vector.load %arg19[%c0_35, %c0_36] : memref<32x128xf32, #tpu.memory_space<vmem>>, vector<32x128xf32>
    %cst_37 = arith.constant dense<0.000000e+00> : vector<8x128xf32>
    %55 = tpu.matmul %4, %54, %cst_37 {dimension_numbers = #tpu.dot_dimension_numbers<[1], [0], [0], [1], [0, 0, 1, 1], [], []>} : vector<8x32xf32>, vector<32x128xf32>, vector<8x128xf32> -> vector<8x128xf32>
    %56 = arith.addf %53, %55 : vector<8x128xf32>
    %57 = vector.extract_strided_slice %56 {offsets = [0, 0], sizes = [8, 32], strides = [1, 1]} : vector<8x128xf32> to vector<8x32xf32>
    %58 = arith.negf %57 : vector<8x32xf32>
    %59 = math.exp %58 : vector<8x32xf32>
    %cst_38 = arith.constant 1.000000e+00 : f32
    %60 = vector.broadcast %cst_38 : f32 to vector<8x32xf32>
    %61 = arith.addf %60, %59 : vector<8x32xf32>
    %62 = arith.divf %60, %61 : vector<8x32xf32>
    %63 = vector.extract_strided_slice %56 {offsets = [0, 32], sizes = [8, 32], strides = [1, 1]} : vector<8x128xf32> to vector<8x32xf32>
    %64 = arith.negf %63 : vector<8x32xf32>
    %65 = math.exp %64 : vector<8x32xf32>
    %cst_39 = arith.constant 1.000000e+00 : f32
    %66 = vector.broadcast %cst_39 : f32 to vector<8x32xf32>
    %67 = arith.addf %66, %65 : vector<8x32xf32>
    %68 = arith.divf %66, %67 : vector<8x32xf32>
    %69 = vector.extract_strided_slice %56 {offsets = [0, 64], sizes = [8, 32], strides = [1, 1]} : vector<8x128xf32> to vector<8x32xf32>
    %70 = math.tanh %69 : vector<8x32xf32>
    %71 = vector.extract_strided_slice %56 {offsets = [0, 96], sizes = [8, 32], strides = [1, 1]} : vector<8x128xf32> to vector<8x32xf32>
    %72 = arith.negf %71 : vector<8x32xf32>
    %73 = math.exp %72 : vector<8x32xf32>
    %cst_40 = arith.constant 1.000000e+00 : f32
    %74 = vector.broadcast %cst_40 : f32 to vector<8x32xf32>
    %75 = arith.addf %74, %73 : vector<8x32xf32>
    %76 = arith.divf %74, %75 : vector<8x32xf32>
    %77 = arith.mulf %68, %5 : vector<8x32xf32>
    %78 = arith.mulf %62, %70 : vector<8x32xf32>
    %79 = arith.addf %77, %78 : vector<8x32xf32>
    %80 = math.tanh %79 : vector<8x32xf32>
    %81 = arith.mulf %76, %80 : vector<8x32xf32>
    %c0_41 = arith.constant 0 : index
    %c0_42 = arith.constant 0 : index
    %82 = vector.load %arg20[%c0_41, %c0_42] : memref<32x128xf32, #tpu.memory_space<vmem>>, vector<32x128xf32>
    %cst_43 = arith.constant dense<0.000000e+00> : vector<8x128xf32>
    %83 = tpu.matmul %81, %82, %cst_43 {dimension_numbers = #tpu.dot_dimension_numbers<[1], [0], [0], [1], [0, 0, 1, 1], [], []>} : vector<8x32xf32>, vector<32x128xf32>, vector<8x128xf32> -> vector<8x128xf32>
    %c0_44 = arith.constant 0 : index
    %c0_45 = arith.constant 0 : index
    %84 = vector.load %arg21[%c0_44, %c0_45] : memref<1x128xf32, #tpu.memory_space<vmem>>, vector<1x128xf32>
    %85 = vector.broadcast %84 : vector<1x128xf32> to vector<8x128xf32>
    %86 = arith.addf %83, %85 : vector<8x128xf32>
    %c0_46 = arith.constant 0 : index
    %c0_47 = arith.constant 0 : index
    %87 = vector.load %arg3[%c0_46, %c0_47] : memref<8x1xi32, #tpu.memory_space<vmem>>, vector<8x1xi32>
    %88 = vector.broadcast %arg0 : i32 to vector<8x1xi32>
    %89 = arith.cmpi sgt, %87, %88 : vector<8x1xi32>
    %90 = vector.shape_cast %89 : vector<8x1xi1> to vector<8x1xi1>
    %91 = vector.broadcast %90 : vector<8x1xi1> to vector<8x32xi1>
    %92 = arith.select %91, %81, %4 : vector<8x32xi1>, vector<8x32xf32>
    %c0_48 = arith.constant 0 : index
    %c0_49 = arith.constant 0 : index
    %93 = vector.load %arg24[%c0_48, %c0_49] : memref<8x32xf32, #tpu.memory_space<vmem>>, vector<8x32xf32>
    tpu.vector_store %arg24[%c0_48, %c0_49], %92 {strides = array<i32>} : memref<8x32xf32, #tpu.memory_space<vmem>>, vector<8x32xf32>,
    %94 = vector.shape_cast %89 : vector<8x1xi1> to vector<8x1xi1>
    %95 = vector.broadcast %94 : vector<8x1xi1> to vector<8x32xi1>
    %96 = arith.select %95, %79, %5 : vector<8x32xi1>, vector<8x32xf32>
    %c0_50 = arith.constant 0 : index
    %c0_51 = arith.constant 0 : index
    %97 = vector.load %arg25[%c0_50, %c0_51] : memref<8x32xf32, #tpu.memory_space<vmem>>, vector<8x32xf32>
    tpu.vector_store %arg25[%c0_50, %c0_51], %96 {strides = array<i32>} : memref<8x32xf32, #tpu.memory_space<vmem>>, vector<8x32xf32>,
    %c0_52 = arith.constant 0 : index
    %c0_53 = arith.constant 0 : index
    %c0_54 = arith.constant 0 : index
    %98 = vector.load %arg4[%c0_52, %c0_53, %c0_54] : memref<1x8x128xf32, #tpu.memory_space<vmem>>, vector<1x8x128xf32>
    %99 = vector.shape_cast %98 : vector<1x8x128xf32> to vector<8x128xf32>
    %100 = vector.shape_cast %89 : vector<8x1xi1> to vector<8x1xi1>
    %101 = vector.broadcast %100 : vector<8x1xi1> to vector<8x128xi1>
    %102 = arith.select %101, %86, %99 : vector<8x128xi1>, vector<8x128xf32>
    %c0_55 = arith.constant 0 : index
    %c0_56 = arith.constant 0 : index
    %c0_57 = arith.constant 0 : index
    %103 = vector.load %arg22[%c0_55, %c0_56, %c0_57] : memref<1x8x128xf32, #tpu.memory_space<vmem>>, vector<1x8x128xf32>
    %104 = vector.shape_cast %103 : vector<1x8x128xf32> to vector<8x128xf32>
    %105 = vector.shape_cast %102 : vector<8x128xf32> to vector<1x8x128xf32>
    tpu.vector_store %arg22[%c0_55, %c0_56, %c0_57], %105 {strides = array<i32>} : memref<1x8x128xf32, #tpu.memory_space<vmem>>, vector<1x8x128xf32>,
    %c0_58 = arith.constant 0 : index
    %c0_59 = arith.constant 0 : index
    %c0_60 = arith.constant 0 : index
    %106 = vector.load %arg5[%c0_58, %c0_59, %c0_60] : memref<1x8x16xf32, #tpu.memory_space<vmem>>, vector<1x8x16xf32>
    %107 = vector.shape_cast %106 : vector<1x8x16xf32> to vector<8x16xf32>
    %108 = vector.shape_cast %89 : vector<8x1xi1> to vector<8x1xi1>
    %109 = vector.broadcast %108 : vector<8x1xi1> to vector<8x16xi1>
    %110 = arith.select %109, %33, %107 : vector<8x16xi1>, vector<8x16xf32>
    %c0_61 = arith.constant 0 : index
    %c0_62 = arith.constant 0 : index
    %c0_63 = arith.constant 0 : index
    %111 = vector.load %arg23[%c0_61, %c0_62, %c0_63] : memref<1x8x16xf32, #tpu.memory_space<vmem>>, vector<1x8x16xf32>
    %112 = vector.shape_cast %111 : vector<1x8x16xf32> to vector<8x16xf32>
    %113 = vector.shape_cast %110 : vector<8x16xf32> to vector<1x8x16xf32>
    tpu.vector_store %arg23[%c0_61, %c0_62, %c0_63], %113 {strides = array<i32>} : memref<1x8x16xf32, #tpu.memory_space<vmem>>, vector<1x8x16xf32>,
    return
  }
  func.func @transform_0(%arg0: i32) -> (i32, i32, i32) {
    %c0_i32 = arith.constant 0 : i32
    %c0_i32_0 = arith.constant 0 : i32
    %c0_i32_1 = arith.constant 0 : i32
    return %arg0, %c0_i32, %c0_i32_0 : i32, i32, i32
  }
  func.func @transform_1(%arg0: i32) -> (i32, i32, i32) {
    %c0_i32 = arith.constant 0 : i32
    %c0_i32_0 = arith.constant 0 : i32
    %c0_i32_1 = arith.constant 0 : i32
    %c0_i32_2 = arith.constant 0 : i32
    return %c0_i32, %c0_i32_0, %c0_i32_1 : i32, i32, i32
  }
  func.func @transform_2(%arg0: i32) -> (i32, i32) {
    %c0_i32 = arith.constant 0 : i32
    %c0_i32_0 = arith.constant 0 : i32
    %c0_i32_1 = arith.constant 0 : i32
    return %c0_i32, %c0_i32_0 : i32, i32
  }
  func.func @transform_3(%arg0: i32) -> (i32, i32, i32) {
    %c0_i32 = arith.constant 0 : i32
    %c0_i32_0 = arith.constant 0 : i32
    %c0_i32_1 = arith.constant 0 : i32
    return %arg0, %c0_i32, %c0_i32_0 : i32, i32, i32
  }
  func.func @transform_4(%arg0: i32) -> (i32, i32, i32) {
    %c0_i32 = arith.constant 0 : i32
    %c0_i32_0 = arith.constant 0 : i32
    %c0_i32_1 = arith.constant 0 : i32
    return %arg0, %c0_i32, %c0_i32_0 : i32, i32, i32
  }
  func.func @transform_5(%arg0: i32) -> (i32, i32) {
    %c0_i32 = arith.constant 0 : i32
    %c0_i32_0 = arith.constant 0 : i32
    %c0_i32_1 = arith.constant 0 : i32
    return %c0_i32, %c0_i32_0 : i32, i32
  }
  func.func @transform_6(%arg0: i32) -> (i32, i32) {
    %c0_i32 = arith.constant 0 : i32
    %c0_i32_0 = arith.constant 0 : i32
    %c0_i32_1 = arith.constant 0 : i32
    return %c0_i32, %c0_i32_0 : i32, i32
  }
  func.func @transform_7(%arg0: i32) -> (i32, i32) {
    %c0_i32 = arith.constant 0 : i32
    %c0_i32_0 = arith.constant 0 : i32
    %c0_i32_1 = arith.constant 0 : i32
    return %c0_i32, %c0_i32_0 : i32, i32
  }
  func.func @transform_8(%arg0: i32) -> (i32, i32) {
    %c0_i32 = arith.constant 0 : i32
    %c0_i32_0 = arith.constant 0 : i32
    %c0_i32_1 = arith.constant 0 : i32
    return %c0_i32, %c0_i32_0 : i32, i32
  }
  func.func @transform_9(%arg0: i32) -> (i32, i32) {
    %c0_i32 = arith.constant 0 : i32
    %c0_i32_0 = arith.constant 0 : i32
    %c0_i32_1 = arith.constant 0 : i32
    return %c0_i32, %c0_i32_0 : i32, i32
  }
  func.func @transform_10(%arg0: i32) -> (i32, i32) {
    %c0_i32 = arith.constant 0 : i32
    %c0_i32_0 = arith.constant 0 : i32
    %c0_i32_1 = arith.constant 0 : i32
    return %c0_i32, %c0_i32_0 : i32, i32
  }
  func.func @transform_11(%arg0: i32) -> (i32, i32) {
    %c0_i32 = arith.constant 0 : i32
    %c0_i32_0 = arith.constant 0 : i32
    %c0_i32_1 = arith.constant 0 : i32
    return %c0_i32, %c0_i32_0 : i32, i32
  }
  func.func @transform_12(%arg0: i32) -> (i32, i32) {
    %c0_i32 = arith.constant 0 : i32
    %c0_i32_0 = arith.constant 0 : i32
    %c0_i32_1 = arith.constant 0 : i32
    return %c0_i32, %c0_i32_0 : i32, i32
  }
  func.func @transform_13(%arg0: i32) -> (i32, i32) {
    %c0_i32 = arith.constant 0 : i32
    %c0_i32_0 = arith.constant 0 : i32
    %c0_i32_1 = arith.constant 0 : i32
    return %c0_i32, %c0_i32_0 : i32, i32
  }
  func.func @transform_14(%arg0: i32) -> (i32, i32) {
    %c0_i32 = arith.constant 0 : i32
    %c0_i32_0 = arith.constant 0 : i32
    %c0_i32_1 = arith.constant 0 : i32
    return %c0_i32, %c0_i32_0 : i32, i32
  }
  func.func @transform_15(%arg0: i32) -> (i32, i32) {
    %c0_i32 = arith.constant 0 : i32
    %c0_i32_0 = arith.constant 0 : i32
    %c0_i32_1 = arith.constant 0 : i32
    return %c0_i32, %c0_i32_0 : i32, i32
  }
  func.func @transform_16(%arg0: i32) -> (i32, i32) {
    %c0_i32 = arith.constant 0 : i32
    %c0_i32_0 = arith.constant 0 : i32
    %c0_i32_1 = arith.constant 0 : i32
    return %c0_i32, %c0_i32_0 : i32, i32
  }
  func.func @transform_17(%arg0: i32) -> (i32, i32) {
    %c0_i32 = arith.constant 0 : i32
    %c0_i32_0 = arith.constant 0 : i32
    %c0_i32_1 = arith.constant 0 : i32
    return %c0_i32, %c0_i32_0 : i32, i32
  }
  func.func @transform_18(%arg0: i32) -> (i32, i32) {
    %c0_i32 = arith.constant 0 : i32
    %c0_i32_0 = arith.constant 0 : i32
    %c0_i32_1 = arith.constant 0 : i32
    return %c0_i32, %c0_i32_0 : i32, i32
  }
  func.func @transform_19(%arg0: i32) -> (i32, i32) {
    %c0_i32 = arith.constant 0 : i32
    %c0_i32_0 = arith.constant 0 : i32
    %c0_i32_1 = arith.constant 0 : i32
    return %c0_i32, %c0_i32_0 : i32, i32
  }
  func.func @transform_20(%arg0: i32) -> (i32, i32) {
    %c0_i32 = arith.constant 0 : i32
    %c0_i32_0 = arith.constant 0 : i32
    %c0_i32_1 = arith.constant 0 : i32
    return %c0_i32, %c0_i32_0 : i32, i32
  }
  func.func @transform_21(%arg0: i32) -> (i32, i32, i32) {
    %c0_i32 = arith.constant 0 : i32
    %c0_i32_0 = arith.constant 0 : i32
    %c0_i32_1 = arith.constant 0 : i32
    return %arg0, %c0_i32, %c0_i32_0 : i32, i32, i32
  }
  func.func @transform_22(%arg0: i32) -> (i32, i32, i32) {
    %c0_i32 = arith.constant 0 : i32
    %c0_i32_0 = arith.constant 0 : i32
    %c0_i32_1 = arith.constant 0 : i32
    return %arg0, %c0_i32, %c0_i32_0 : i32, i32, i32
  }
}

</mosaic_0001>

<bundles_post_ra>
// kernel: net_forward.2
= control target key start
LH: loop header
LB: loop body
LE: loop exit
PB: predicated region body
PF: predicated region fallthrough
CT: control target
= control target key end

     0   :  { %vm92_vm0 = vcmask 261120   ;;  %s1809_s1 = inlined_call_operand.vmem [shape: f32[32,32], index: 1, kind: input, shape index: {}]   ;;  %s1810_s0 = inlined_call_operand.vmem [shape: f32[512,32], index: 0, kind: input, shape index: {}]   ;;  %s1811_s3 = inlined_call_operand.vmem [shape: f32[32,512], index: 3, kind: input, shape index: {}]   ;;  %s1812_s2 = inlined_call_operand.vmem [shape: f32[1,32], index: 2, kind: input, shape index: {}]   ;;  %s1813_s4 = inlined_call_operand.vmem [shape: f32[32,32], index: 4, kind: output, shape index: {}]  }
   0x1   :  { %v81_v0 = vld [vmem:[%s1809_s1] sm:$0xff]  ;;  %v82_v1 = vld [vmem:[%s1809_s1 + $0x8] sm:$0xff]  ;;  %v83_v2 = vld [vmem:[%s1809_s1 + $0x10] sm:$0xff] }
   0x2   :  { %v1253_v3 = vpack.c.bf16 %v82_v1, %v81_v0  ;;  %v84_v4 = vld [vmem:[%s1809_s1 + $0x18] sm:$0xff]  ;;  %v17_v5 = vld [vmem:[%s1810_s0] sm:$0xff]  ;;  %v18_v7 = vld [vmem:[%s1810_s0 + $0x8] sm:$0xff] }
   0x3   :  { %v1257_v6 = vpack.c.bf16 %v84_v4, %v83_v2  ;;  %1157 = vmatprep.mubr.msk.f32.mxu0 %vm92_vm0, %v17_v5  ;;  %v19_v8 = vld [vmem:[%s1810_s0 + $0x10] sm:$0xff]  ;;  %v61_v9 = vld [vmem:[%s1810_s0 + $0x160] sm:$0xff]  ;;  %v62_v10 = vld [vmem:[%s1810_s0 + $0x168] sm:$0xff] }
   0x4   :  { %1254 = vmatprep.subr.bf16.mxu0 %v1253_v3  ;;  %1325 = vmatprep.subr.bf16.mxu1 %v1253_v3  ;;  %v20_v11 = vld [vmem:[%s1810_s0 + $0x18] sm:$0xff]  ;;  %v63_v12 = vld [vmem:[%s1810_s0 + $0x170] sm:$0xff]  ;;  %v21_v13 = vld [vmem:[%s1810_s0 + $0x20] sm:$0xff] }
   0x5   :  { %1256 = vmatpush3.bf16.msra.mxu0 %v1253_v3  ;;  %1327 = vmatpush3.bf16.msra.mxu1 %v1253_v3  ;;  %v64_v14 = vld [vmem:[%s1810_s0 + $0x178] sm:$0xff]  ;;  %v65_v15 = vld [vmem:[%s1810_s0 + $0x180] sm:$0xff]  ;;  %v22_v16 = vld [vmem:[%s1810_s0 + $0x28] sm:$0xff] }
   0x6   :  { %1258 = vmatprep.subr.bf16.mxu0 %v1257_v6  ;;  %1326 = vmatprep.subr.bf16.mxu1 %v1257_v6  ;;  %v23_v17 = vld [vmem:[%s1810_s0 + $0x30] sm:$0xff]  ;;  %v66_v18 = vld [vmem:[%s1810_s0 + $0x188] sm:$0xff]  ;;  %v24_v20 = vld [vmem:[%s1810_s0 + $0x38] sm:$0xff] }
   0x7   :  { %1223 = vmatprep.mubr.msk.f32.mxu1 %vm92_vm0, %v61_v9  ;;  %v67_v19 = vld [vmem:[%s1810_s0 + $0x190] sm:$0xff]  ;;  %v25_v21 = vld [vmem:[%s1810_s0 + $0x40] sm:$0xff]  ;;  %v68_v22 = vld [vmem:[%s1810_s0 + $0x198] sm:$0xff] }
   0x8   :  { %v69_v23 = vld [vmem:[%s1810_s0 + $0x1a0] sm:$0xff]  ;;  %v26_v24 = vld [vmem:[%s1810_s0 + $0x48] sm:$0xff]  ;;  %v27_v25 = vld [vmem:[%s1810_s0 + $0x50] sm:$0xff] }
   0x9   :  { %1260 = vmatpush3.bf16.msra.mxu0 %v1257_v6  ;;  %1328 = vmatpush3.bf16.msra.mxu1 %v1257_v6  ;;  %v70_v26 = vld [vmem:[%s1810_s0 + $0x1a8] sm:$0xff]  ;;  %v71_v27 = vld [vmem:[%s1810_s0 + $0x1b0] sm:$0xff]  ;;  %v28_v28 = vld [vmem:[%s1810_s0 + $0x58] sm:$0xff] }
   0xa   :  { %v29_v29 = vld [vmem:[%s1810_s0 + $0x60] sm:$0xff]  ;;  %v72_v30 = vld [vmem:[%s1810_s0 + $0x1b8] sm:$0xff]  ;;  %v30_v32 = vld [vmem:[%s1810_s0 + $0x68] sm:$0xff] }
   0xb   :  { %v73_v31 = vld [vmem:[%s1810_s0 + $0x1c0] sm:$0xff]  ;;  %v31_v33 = vld [vmem:[%s1810_s0 + $0x70] sm:$0xff]  ;;  %v74_v34 = vld [vmem:[%s1810_s0 + $0x1c8] sm:$0xff] }
   0xc   :  { %1158 = vmatmul.mubr.msk.f32.vlgmr.msra.gmra.mrb[0].mxu0 %vm92_vm0, %v18_v7  ;;  %1224 = vmatmul.mubr.msk.f32.vlgmr.msra.gmra.mrb[0].mxu1 %vm92_vm0, %v62_v10  ;;  %v75_v35 = vld [vmem:[%s1810_s0 + $0x1d0] sm:$0xff]  ;;  %v32_v36 = vld [vmem:[%s1810_s0 + $0x78] sm:$0xff]  ;;  %v33_v37 = vld [vmem:[%s1810_s0 + $0x80] sm:$0xff] }
   0xd   :  { %1160 = vmatprep.mubr.msk.f32.mxu0 %vm92_vm0, %v19_v8  ;;  %1226 = vmatprep.mubr.msk.f32.mxu1 %vm92_vm0, %v63_v12  ;;  %v76_v38 = vld [vmem:[%s1810_s0 + $0x1d8] sm:$0xff]  ;;  %v77_v39 = vld [vmem:[%s1810_s0 + $0x1e0] sm:$0xff]  ;;  %v34_v40 = vld [vmem:[%s1810_s0 + $0x88] sm:$0xff] }
   0xe   :  { %v35_v41 = vld [vmem:[%s1810_s0 + $0x90] sm:$0xff]  ;;  %v78_v42 = vld [vmem:[%s1810_s0 + $0x1e8] sm:$0xff]  ;;  %v36_v44 = vld [vmem:[%s1810_s0 + $0x98] sm:$0xff] }
   0xf   :  { %v79_v43 = vld [vmem:[%s1810_s0 + $0x1f0] sm:$0xff]  ;;  %v37_v45 = vld [vmem:[%s1810_s0 + $0xa0] sm:$0xff]  ;;  %v80_v46 = vld [vmem:[%s1810_s0 + $0x1f8] sm:$0xff] }
  0x10   :  { %1161 = vmatmul.mubr.msk.f32.gmra.mrb[2].mxu0 %vm92_vm0, %v20_v11  ;;  %1227 = vmatmul.mubr.msk.f32.gmra.mrb[2].mxu1 %vm92_vm0, %v64_v14  ;;  %v38_v47 = vld [vmem:[%s1810_s0 + $0xa8] sm:$0xff]  ;;  %v39_v48 = vld [vmem:[%s1810_s0 + $0xb0] sm:$0xff]  ;;  %v40_v49 = vld [vmem:[%s1810_s0 + $0xb8] sm:$0xff] }
  0x11   :  { %1163 = vmatprep.mubr.msk.f32.mxu0 %vm92_vm0, %v21_v13  ;;  %1229 = vmatprep.mubr.msk.f32.mxu1 %vm92_vm0, %v65_v15  ;;  %v41_v50 = vld [vmem:[%s1810_s0 + $0xc0] sm:$0xff]  ;;  %v42_v51 = vld [vmem:[%s1810_s0 + $0xc8] sm:$0xff]  ;;  %v43_v52 = vld [vmem:[%s1810_s0 + $0xd0] sm:$0xff] }
  0x12   :  { %v44_v53 = vld [vmem:[%s1810_s0 + $0xd8] sm:$0xff]  ;;  %v45_v54 = vld [vmem:[%s1810_s0 + $0xe0] sm:$0xff]  ;;  %v46_v55 = vld [vmem:[%s1810_s0 + $0xe8] sm:$0xff] }
  0x13   :  { %v47_v56 = vld [vmem:[%s1810_s0 + $0xf0] sm:$0xff]  ;;  %v48_v57 = vld [vmem:[%s1810_s0 + $0xf8] sm:$0xff]  ;;  %v49_v58 = vld [vmem:[%s1810_s0 + $0x100] sm:$0xff] }
  0x14   :  { %1164 = vmatmul.mubr.msk.f32.gmra.mrb[4].mxu0 %vm92_vm0, %v22_v16  ;;  %1230 = vmatmul.mubr.msk.f32.gmra.mrb[4].mxu1 %vm92_vm0, %v66_v18  ;;  %v50_v59 = vld [vmem:[%s1810_s0 + $0x108] sm:$0xff]  ;;  %v51_v60 = vld [vmem:[%s1810_s0 + $0x110] sm:$0xff]  ;;  %v52_v61 = vld [vmem:[%s1810_s0 + $0x118] sm:$0xff] }
  0x15   :  { %1166 = vmatprep.mubr.msk.f32.mxu0 %vm92_vm0, %v23_v17  ;;  %1232 = vmatprep.mubr.msk.f32.mxu1 %vm92_vm0, %v67_v19  ;;  %v53_v62 = vld [vmem:[%s1810_s0 + $0x120] sm:$0xff]  ;;  %v54_v63 = vld [vmem:[%s1810_s0 + $0x128] sm:$0xff]  ;;  %v55_v0 = vld [vmem:[%s1810_s0 + $0x130] sm:$0xff] }
  0x16   :  { %v56_v1 = vld [vmem:[%s1810_s0 + $0x138] sm:$0xff]  ;;  %v57_v2 = vld [vmem:[%s1810_s0 + $0x140] sm:$0xff]  ;;  %v58_v3 = vld [vmem:[%s1810_s0 + $0x148] sm:$0xff] }
  0x17   :  { %v59_v4 = vld [vmem:[%s1810_s0 + $0x150] sm:$0xff]  ;;  %v60_v5 = vld [vmem:[%s1810_s0 + $0x158] sm:$0xff]  ;;  %v735_v6 = vld [vmem:[%s1811_s3 + $0x8] sm:$0xff] }
  0x18   :  { %1167 = vmatmul.mubr.msk.f32.gmra.mrb[6].mxu0 %vm92_vm0, %v24_v20  ;;  %1233 = vmatmul.mubr.msk.f32.gmra.mrb[6].mxu1 %vm92_vm0, %v68_v22  ;;  %v1628_v7 = vld [vmem:[%s1812_s2] ss:$0 sm:$0xff] }
  0x19   :  { %1169 = vmatprep.mubr.msk.f32.mxu0 %vm92_vm0, %v25_v21  ;;  %1235 = vmatprep.mubr.msk.f32.mxu1 %vm92_vm0, %v69_v23 }
  0x1c   :  { %1170 = vmatmul.mubr.msk.f32.gmra.mrb[8].mxu0 %vm92_vm0, %v26_v24  ;;  %1236 = vmatmul.mubr.msk.f32.gmra.mrb[8].mxu1 %vm92_vm0, %v70_v26 }
  0x1d   :  { %1172 = vmatprep.mubr.msk.f32.mxu0 %vm92_vm0, %v27_v25  ;;  %1238 = vmatprep.mubr.msk.f32.mxu1 %vm92_vm0, %v71_v27 }
  0x20   :  { %1173 = vmatmul.mubr.msk.f32.gmra.mrb[10].mxu0 %vm92_vm0, %v28_v28  ;;  %1239 = vmatmul.mubr.msk.f32.gmra.mrb[10].mxu1 %vm92_vm0, %v72_v30 }
  0x21   :  { %1175 = vmatprep.mubr.msk.f32.mxu0 %vm92_vm0, %v29_v29  ;;  %1241 = vmatprep.mubr.msk.f32.mxu1 %vm92_vm0, %v73_v31 }
  0x24   :  { %1176 = vmatmul.mubr.msk.f32.gmra.mrb[12].mxu0 %vm92_vm0, %v30_v32  ;;  %1242 = vmatmul.mubr.msk.f32.gmra.mrb[12].mxu1 %vm92_vm0, %v74_v34 }
  0x25   :  { %1178 = vmatprep.mubr.msk.f32.mxu0 %vm92_vm0, %v31_v33  ;;  %1244 = vmatprep.mubr.msk.f32.mxu1 %vm92_vm0, %v75_v35 }
  0x28   :  { %1179 = vmatmul.mubr.msk.f32.gmra.mrb[14].mxu0 %vm92_vm0, %v32_v36  ;;  %1245 = vmatmul.mubr.msk.f32.gmra.mrb[14].mxu1 %vm92_vm0, %v76_v38 }
  0x29   :  { %1181 = vmatprep.mubr.msk.f32.mxu0 %vm92_vm0, %v33_v37  ;;  %1247 = vmatprep.mubr.msk.f32.mxu1 %vm92_vm0, %v77_v39 }
  0x2c   :  { %1182 = vmatmul.mubr.msk.f32.gmra.mrb[16].mxu0 %vm92_vm0, %v34_v40  ;;  %1248 = vmatmul.mubr.msk.f32.gmra.mrb[16].mxu1 %vm92_vm0, %v78_v42 }
  0x2d   :  { %1184 = vmatprep.mubr.msk.f32.mxu0 %vm92_vm0, %v35_v41  ;;  %1250 = vmatprep.mubr.msk.f32.mxu1 %vm92_vm0, %v79_v43 }
  0x30   :  { %1185 = vmatmul.mubr.msk.f32.gmra.mrb[18].mxu0 %vm92_vm0, %v36_v44  ;;  %1251 = vmatmul.mubr.msk.f32.gmra.mrb[18].mxu1 %vm92_vm0, %v80_v46 }
  0x31   :  { %1187 = vmatprep.mubr.msk.f32.mxu0 %vm92_vm0, %v37_v45  ;;  %814 = vmatprep.mubr.f32.mxu1 %v735_v6 }
  0x34   :  { %1188 = vmatmul.mubr.msk.f32.gmra.mrb[20].mxu0 %vm92_vm0, %v38_v47 }
  0x35   :  { %1190 = vmatprep.mubr.msk.f32.mxu0 %vm92_vm0, %v39_v48 }
  0x38   :  { %1191 = vmatmul.mubr.msk.f32.gmra.mrb[22].mxu0 %vm92_vm0, %v40_v49 }
  0x39   :  { %1193 = vmatprep.mubr.msk.f32.mxu0 %vm92_vm0, %v41_v50 }
  0x3c   :  { %1194 = vmatmul.mubr.msk.f32.gmra.mrb[24].mxu0 %vm92_vm0, %v42_v51 }
  0x3d   :  { %1196 = vmatprep.mubr.msk.f32.mxu0 %vm92_vm0, %v43_v52 }
  0x40   :  { %1197 = vmatmul.mubr.msk.f32.gmra.mrb[26].mxu0 %vm92_vm0, %v44_v53 }
  0x41   :  { %1199 = vmatprep.mubr.msk.f32.mxu0 %vm92_vm0, %v45_v54 }
  0x44   :  { %1200 = vmatmul.mubr.msk.f32.gmra.mrb[28].mxu0 %vm92_vm0, %v46_v55 }
  0x45   :  { %1202 = vmatprep.mubr.msk.f32.mxu0 %vm92_vm0, %v47_v56 }
  0x48   :  { %1203 = vmatmul.mubr.msk.f32.gmra.mrb[30].mxu0 %vm92_vm0, %v48_v57 }
  0x49   :  { %1205 = vmatprep.mubr.msk.f32.mxu0 %vm92_vm0, %v49_v58 }
  0x4c   :  { %1206 = vmatmul.mubr.msk.f32.gmra.mrb[32].mxu0 %vm92_vm0, %v50_v59 }
  0x4d   :  { %1208 = vmatprep.mubr.msk.f32.mxu0 %vm92_vm0, %v51_v60 }
  0x50   :  { %1209 = vmatmul.mubr.msk.f32.gmra.mrb[34].mxu0 %vm92_vm0, %v52_v61 }
  0x51   :  { %1211 = vmatprep.mubr.msk.f32.mxu0 %vm92_vm0, %v53_v62 }
  0x54   :  { %1212 = vmatmul.mubr.msk.f32.gmra.mrb[36].mxu0 %vm92_vm0, %v54_v63 }
  0x55   :  { %1214 = vmatprep.mubr.msk.f32.mxu0 %vm92_vm0, %v55_v0 }
  0x58   :  { %1215 = vmatmul.mubr.msk.f32.gmra.mrb[38].mxu0 %vm92_vm0, %v56_v1 }
  0x59   :  { %1217 = vmatprep.mubr.msk.f32.mxu0 %vm92_vm0, %v57_v2 }
  0x5c   :  { %1218 = vmatmul.mubr.msk.f32.gmra.mrb[40].mxu0 %vm92_vm0, %v58_v3 }
  0x5d   :  { %1220 = vmatprep.mubr.msk.f32.mxu0 %vm92_vm0, %v59_v4 }
  0x60   :  { %1221 = vmatmul.mubr.msk.f32.gmra.mrb[42].mxu0 %vm92_vm0, %v60_v5 }
  0xdf   :  { %v1159_v8 = vpop.f32.mrb[0].mxu0  ;;  %v1225_v12 = vpop.f32.mrb[0].mxu1 }
  0xe0   :  { %v357_v9 = vadd.f32 %v1159_v8, %v1628_v7  ;;  %v351_v10 = vpop.f32.mrb[1].mxu0  ;;  %v577_v14 = vadd.f32 %v1225_v12, %v1628_v7  ;;  %v571_v15 = vpop.f32.mrb[1].mxu1 }
  0xe1   :  { %v352_v11 = vadd.f32 %v1628_v7, %v351_v10  ;;  %v572_v18 = vadd.f32 %v1628_v7, %v571_v15 }
  0xe2   :  { %v671_v13 = vmax.f32 %v357_v9, 0.0  ;;  %v715_v21 = vmax.f32 %v577_v14, 0.0 }
  0xe3   :  { %v670_v16 = vmax.f32 %v352_v11, 0.0  ;;  %v1162_v17 = vpop.f32.mrb[2].mxu0  ;;  %v714_v24 = vmax.f32 %v572_v18, 0.0  ;;  %v1228_v25 = vpop.f32.mrb[2].mxu1 }
  0xe4   :  { %v367_v19 = vadd.f32 %v1162_v17, %v1628_v7  ;;  %v361_v20 = vpop.f32.mrb[3].mxu0  ;;  %v587_v27 = vadd.f32 %v1228_v25, %v1628_v7  ;;  %v581_v28 = vpop.f32.mrb[3].mxu1 }
  0xe5   :  { %v1635_v22 = vpack.c.bf16 %v671_v13, %v670_v16  ;;  %v362_v23 = vadd.f32 %v1628_v7, %v361_v20  ;;  %v1639_v31 = vpack.c.bf16 %v715_v21, %v714_v24  ;;  %v582_v32 = vadd.f32 %v1628_v7, %v581_v28 }
  0xe6   :  { %v673_v26 = vmax.f32 %v367_v19, 0.0  ;;  %v717_v35 = vmax.f32 %v587_v27, 0.0 }
  0xe7   :  { %v672_v29 = vmax.f32 %v362_v23, 0.0  ;;  %v1165_v30 = vpop.f32.mrb[4].mxu0  ;;  %v716_v38 = vmax.f32 %v582_v32, 0.0  ;;  %v1231_v39 = vpop.f32.mrb[4].mxu1 }
  0xe8   :  { %v377_v33 = vadd.f32 %v1165_v30, %v1628_v7  ;;  %v371_v34 = vpop.f32.mrb[5].mxu0  ;;  %v597_v41 = vadd.f32 %v1231_v39, %v1628_v7  ;;  %v591_v42 = vpop.f32.mrb[5].mxu1 }
  0xe9   :  { %v1643_v36 = vpack.c.bf16 %v673_v26, %v672_v29  ;;  %v372_v37 = vadd.f32 %v1628_v7, %v371_v34  ;;  %v1647_v45 = vpack.c.bf16 %v717_v35, %v716_v38  ;;  %v592_v46 = vadd.f32 %v1628_v7, %v591_v42 }
  0xea   :  { %v675_v40 = vmax.f32 %v377_v33, 0.0  ;;  %v719_v49 = vmax.f32 %v597_v41, 0.0 }
  0xeb   :  { %v674_v43 = vmax.f32 %v372_v37, 0.0  ;;  %v1168_v44 = vpop.f32.mrb[6].mxu0  ;;  %v718_v52 = vmax.f32 %v592_v46, 0.0  ;;  %v1234_v53 = vpop.f32.mrb[6].mxu1 }
  0xec   :  { %v387_v47 = vadd.f32 %v1168_v44, %v1628_v7  ;;  %v381_v48 = vpop.f32.mrb[7].mxu0  ;;  %v607_v55 = vadd.f32 %v1234_v53, %v1628_v7  ;;  %v601_v56 = vpop.f32.mrb[7].mxu1 }
  0xed   :  { %v1651_v50 = vpack.c.bf16 %v675_v40, %v674_v43  ;;  %v382_v51 = vadd.f32 %v1628_v7, %v381_v48  ;;  %v1655_v59 = vpack.c.bf16 %v719_v49, %v718_v52  ;;  %v602_v60 = vadd.f32 %v1628_v7, %v601_v56 }
  0xee   :  { %v677_v54 = vmax.f32 %v387_v47, 0.0  ;;  %v721_v63 = vmax.f32 %v607_v55, 0.0 }
  0xef   :  { %v676_v57 = vmax.f32 %v382_v51, 0.0  ;;  %v1171_v58 = vpop.f32.mrb[8].mxu0  ;;  %v720_v2 = vmax.f32 %v602_v60, 0.0  ;;  %v1237_v3 = vpop.f32.mrb[8].mxu1 }
  0xf0   :  { %v397_v61 = vadd.f32 %v1171_v58, %v1628_v7  ;;  %v391_v62 = vpop.f32.mrb[9].mxu0  ;;  %v617_v5 = vadd.f32 %v1237_v3, %v1628_v7  ;;  %v611_v6 = vpop.f32.mrb[9].mxu1 }
  0xf1   :  { %v1659_v0 = vpack.c.bf16 %v677_v54, %v676_v57  ;;  %v392_v1 = vadd.f32 %v1628_v7, %v391_v62  ;;  %v1663_v10 = vpack.c.bf16 %v721_v63, %v720_v2  ;;  %v612_v11 = vadd.f32 %v1628_v7, %v611_v6 }
  0xf2   :  { %v679_v4 = vmax.f32 %v397_v61, 0.0  ;;  %v723_v14 = vmax.f32 %v617_v5, 0.0 }
  0xf3   :  { %v678_v8 = vmax.f32 %v392_v1, 0.0  ;;  %v1174_v9 = vpop.f32.mrb[10].mxu0  ;;  %v722_v17 = vmax.f32 %v612_v11, 0.0  ;;  %v1240_v18 = vpop.f32.mrb[10].mxu1 }
  0xf4   :  { %v407_v12 = vadd.f32 %v1174_v9, %v1628_v7  ;;  %v401_v13 = vpop.f32.mrb[11].mxu0  ;;  %v627_v20 = vadd.f32 %v1240_v18, %v1628_v7  ;;  %v621_v21 = vpop.f32.mrb[11].mxu1 }
  0xf5   :  { %v1667_v15 = vpack.c.bf16 %v679_v4, %v678_v8  ;;  %v402_v16 = vadd.f32 %v1628_v7, %v401_v13  ;;  %v1671_v25 = vpack.c.bf16 %v723_v14, %v722_v17  ;;  %v622_v26 = vadd.f32 %v1628_v7, %v621_v21 }
  0xf6   :  { %v681_v19 = vmax.f32 %v407_v12, 0.0  ;;  %v725_v29 = vmax.f32 %v627_v20, 0.0 }
  0xf7   :  { %v680_v23 = vmax.f32 %v402_v16, 0.0  ;;  %v1177_v24 = vpop.f32.mrb[12].mxu0  ;;  %v724_v33 = vmax.f32 %v622_v26, 0.0  ;;  %v1243_v34 = vpop.f32.mrb[12].mxu1 }
  0xf8   :  { %v417_v27 = vadd.f32 %v1177_v24, %v1628_v7  ;;  %v411_v28 = vpop.f32.mrb[13].mxu0  ;;  %v637_v37 = vadd.f32 %v1243_v34, %v1628_v7  ;;  %v631_v38 = vpop.f32.mrb[13].mxu1 }
  0xf9   :  { %v1675_v30 = vpack.c.bf16 %v681_v19, %v680_v23  ;;  %v412_v32 = vadd.f32 %v1628_v7, %v411_v28  ;;  %v1679_v41 = vpack.c.bf16 %v725_v29, %v724_v33  ;;  %v632_v42 = vadd.f32 %v1628_v7, %v631_v38 }
  0xfa   :  { %v683_v35 = vmax.f32 %v417_v27, 0.0  ;;  %v727_v46 = vmax.f32 %v637_v37, 0.0 }
  0xfb   :  { %v682_v39 = vmax.f32 %v412_v32, 0.0  ;;  %v1180_v40 = vpop.f32.mrb[14].mxu0  ;;  %v726_v49 = vmax.f32 %v632_v42, 0.0  ;;  %v1246_v51 = vpop.f32.mrb[14].mxu1 }
  0xfc   :  { %v427_v43 = vadd.f32 %v1180_v40, %v1628_v7  ;;  %v421_v44 = vpop.f32.mrb[15].mxu0  ;;  %v647_v53 = vadd.f32 %v1246_v51, %v1628_v7  ;;  %v641_v54 = vpop.f32.mrb[15].mxu1 }
  0xfd   :  { %v1683_v47 = vpack.c.bf16 %v683_v35, %v682_v39  ;;  %v422_v48 = vadd.f32 %v1628_v7, %v421_v44  ;;  %v1687_v57 = vpack.c.bf16 %v727_v46, %v726_v49  ;;  %v642_v58 = vadd.f32 %v1628_v7, %v641_v54 }
  0xfe   :  { %v685_v52 = vmax.f32 %v427_v43, 0.0  ;;  %v729_v62 = vmax.f32 %v647_v53, 0.0 }
  0xff   :  { %v684_v55 = vmax.f32 %v422_v48, 0.0  ;;  %v1183_v56 = vpop.f32.mrb[16].mxu0  ;;  %v728_v2 = vmax.f32 %v642_v58, 0.0  ;;  %v1249_v3 = vpop.f32.mrb[16].mxu1 }
 0x100   :  { %v437_v60 = vadd.f32 %v1183_v56, %v1628_v7  ;;  %v431_v61 = vpop.f32.mrb[17].mxu0  ;;  %v657_v5 = vadd.f32 %v1249_v3, %v1628_v7  ;;  %v651_v6 = vpop.f32.mrb[17].mxu1 }
 0x101   :  { %v1691_v63 = vpack.c.bf16 %v685_v52, %v684_v55  ;;  %v432_v1 = vadd.f32 %v1628_v7, %v431_v61  ;;  %v1695_v11 = vpack.c.bf16 %v729_v62, %v728_v2  ;;  %v652_v12 = vadd.f32 %v1628_v7, %v651_v6 }
 0x102   :  { %v687_v4 = vmax.f32 %v437_v60, 0.0  ;;  %v731_v16 = vmax.f32 %v657_v5, 0.0 }
 0x103   :  { %v686_v8 = vmax.f32 %v432_v1, 0.0  ;;  %v1186_v9 = vpop.f32.mrb[18].mxu0  ;;  %v730_v19 = vmax.f32 %v652_v12, 0.0  ;;  %v1252_v20 = vpop.f32.mrb[18].mxu1 }
 0x104   :  { %v447_v13 = vadd.f32 %v1186_v9, %v1628_v7  ;;  %v441_v14 = vpop.f32.mrb[19].mxu0  ;;  %v667_v23 = vadd.f32 %v1252_v20, %v1628_v7  ;;  %v661_v24 = vpop.f32.mrb[19].mxu1 }
 0x105   :  { %v1261_v17 = vpack.c.bf16 %v687_v4, %v686_v8  ;;  %v442_v18 = vadd.f32 %v1628_v7, %v441_v14  ;;  %v1701_v28 = vpack.c.bf16 %v731_v16, %v730_v19  ;;  %v662_v29 = vadd.f32 %v1628_v7, %v661_v24 }
 0x106   :  { %v689_v21 = vmax.f32 %v447_v13, 0.0  ;;  %v733_v34 = vmax.f32 %v667_v23, 0.0 }
 0x107   :  { %v688_v26 = vmax.f32 %v442_v18, 0.0  ;;  %v1189_v27 = vpop.f32.mrb[20].mxu0  ;;  %1262 = vmatprep.subr.bf16.mxu1 %v1261_v17  ;;  %v732_v38 = vmax.f32 %v662_v29, 0.0 }
 0x108   :  { %v457_v32 = vadd.f32 %v1189_v27, %v1628_v7  ;;  %v451_v33 = vpop.f32.mrb[21].mxu0  ;;  %1264 = vmatpush3.bf16.msra.mxu1 %v1635_v22 }
 0x109   :  { %v1265_v35 = vpack.c.bf16 %v689_v21, %v688_v26  ;;  %v452_v37 = vadd.f32 %v1628_v7, %v451_v33  ;;  %v1707_v43 = vpack.c.bf16 %v733_v34, %v732_v38  ;;  %v734_v34 = vld [vmem:[%s1811_s3] sm:$0xff] }
 0x10a   :  { %v691_v39 = vmax.f32 %v457_v32, 0.0 }
 0x10b   :  { %v690_v40 = vmax.f32 %v452_v37, 0.0  ;;  %v1192_v42 = vpop.f32.mrb[22].mxu0  ;;  %1266 = vmatprep.subr.bf16.mxu1 %v1265_v35  ;;  %v739_v37 = vld [vmem:[%s1811_s3 + $0x28] sm:$0xff] }
 0x10c   :  { %v467_v44 = vadd.f32 %v1192_v42, %v1628_v7  ;;  %v461_v46 = vpop.f32.mrb[23].mxu0  ;;  %1268 = vmatpush3.bf16.msra.mxu1 %v1643_v36 }
 0x10d   :  { %v1269_v48 = vpack.c.bf16 %v691_v39, %v690_v40  ;;  %v462_v49 = vadd.f32 %v1628_v7, %v461_v46 }
 0x10e   :  { %v693_v22 = vmax.f32 %v467_v44, 0.0  ;;  %v738_v44 = vld [vmem:[%s1811_s3 + $0x20] sm:$0xff] }
 0x10f   :  { %v692_v51 = vmax.f32 %v462_v49, 0.0  ;;  %v1195_v52 = vpop.f32.mrb[24].mxu0  ;;  %1270 = vmatprep.subr.bf16.mxu1 %v1269_v48  ;;  %v743_v48 = vld [vmem:[%s1811_s3 + $0x48] sm:$0xff] }
 0x110   :  { %v477_v53 = vadd.f32 %v1195_v52, %v1628_v7  ;;  %v471_v54 = vpop.f32.mrb[25].mxu0  ;;  %1272 = vmatpush3.bf16.msra.mxu1 %v1651_v50 }
 0x111   :  { %v1273_v55 = vpack.c.bf16 %v693_v22, %v692_v51  ;;  %v472_v56 = vadd.f32 %v1628_v7, %v471_v54  ;;  %v742_v54 = vld [vmem:[%s1811_s3 + $0x40] sm:$0xff] }
 0x112   :  { %v695_v58 = vmax.f32 %v477_v53, 0.0 }
 0x113   :  { %v694_v60 = vmax.f32 %v472_v56, 0.0  ;;  %v1198_v61 = vpop.f32.mrb[26].mxu0  ;;  %1274 = vmatprep.subr.bf16.mxu1 %v1273_v55  ;;  %v747_v56 = vld [vmem:[%s1811_s3 + $0x68] sm:$0xff] }
 0x114   :  { %v487_v36 = vadd.f32 %v1198_v61, %v1628_v7  ;;  %v481_v62 = vpop.f32.mrb[27].mxu0  ;;  %1276 = vmatpush3.bf16.msra.mxu1 %v1659_v0 }
 0x115   :  { %v1277_v1 = vpack.c.bf16 %v695_v58, %v694_v60  ;;  %v482_v2 = vadd.f32 %v1628_v7, %v481_v62 }
 0x116   :  { %v697_v3 = vmax.f32 %v487_v36, 0.0 }
 0x117   :  { %v696_v4 = vmax.f32 %v482_v2, 0.0  ;;  %v1201_v5 = vpop.f32.mrb[28].mxu0  ;;  %1278 = vmatprep.subr.bf16.mxu1 %v1277_v1  ;;  %v746_v1 = vld [vmem:[%s1811_s3 + $0x60] sm:$0xff] }
 0x118   :  { %v497_v50 = vadd.f32 %v1201_v5, %v1628_v7  ;;  %v491_v6 = vpop.f32.mrb[29].mxu0  ;;  %1280 = vmatpush3.bf16.msra.mxu1 %v1667_v15 }
 0x119   :  { %v1281_v8 = vpack.c.bf16 %v697_v3, %v696_v4  ;;  %v492_v9 = vadd.f32 %v1628_v7, %v491_v6  ;;  %v737_v3 = vld [vmem:[%s1811_s3 + $0x18] sm:$0xff] }
 0x11a   :  { %v699_v12 = vmax.f32 %v497_v50, 0.0 }
 0x11b   :  { %v698_v13 = vmax.f32 %v492_v9, 0.0  ;;  %v1204_v14 = vpop.f32.mrb[30].mxu0  ;;  %1282 = vmatprep.subr.bf16.mxu1 %v1281_v8 }
 0x11c   :  { %v507_v0 = vadd.f32 %v1204_v14, %v1628_v7  ;;  %v501_v16 = vpop.f32.mrb[31].mxu0  ;;  %1284 = vmatpush3.bf16.msra.mxu1 %v1675_v30 }
 0x11d   :  { %v1285_v17 = vpack.c.bf16 %v699_v12, %v698_v13  ;;  %v502_v18 = vadd.f32 %v1628_v7, %v501_v16 }
 0x11e   :  { %v701_v19 = vmax.f32 %v507_v0, 0.0 }
 0x11f   :  { %v700_v20 = vmax.f32 %v502_v18, 0.0  ;;  %1286 = vmatprep.subr.bf16.mxu1 %v1285_v17  ;;  %v1207_v21 = vpop.f32.mrb[32].mxu0 }
 0x120   :  { %v517_v15 = vadd.f32 %v1207_v21, %v1628_v7  ;;  %1288 = vmatpush3.bf16.msra.mxu1 %v1683_v47  ;;  %v511_v23 = vpop.f32.mrb[33].mxu0 }
 0x121   :  { %v1289_v24 = vpack.c.bf16 %v701_v19, %v700_v20  ;;  %v512_v26 = vadd.f32 %v1628_v7, %v511_v23 }
 0x122   :  { %v703_v27 = vmax.f32 %v517_v15, 0.0 }
 0x123   :  { %v702_v29 = vmax.f32 %v512_v26, 0.0  ;;  %1290 = vmatprep.subr.bf16.mxu1 %v1289_v24  ;;  %v1210_v32 = vpop.f32.mrb[34].mxu0 }
 0x124   :  { %v527_v30 = vadd.f32 %v1210_v32, %v1628_v7  ;;  %1292 = vmatpush3.bf16.msra.mxu1 %v1691_v63  ;;  %v521_v33 = vpop.f32.mrb[35].mxu0 }
 0x125   :  { %v1295_v35 = vpack.c.bf16 %v703_v27, %v702_v29  ;;  %v522_v47 = vadd.f32 %v1628_v7, %v521_v33  ;;  %1294 = vmatprep.subr.bf16.mxu1 %v1655_v59 }
 0x126   :  { %v705_v38 = vmax.f32 %v527_v30, 0.0 }
 0x127   :  { %v704_v39 = vmax.f32 %v522_v47, 0.0  ;;  %v1213_v40 = vpop.f32.mrb[36].mxu0  ;;  %815 = vmatmul.mubr.f32.vlgmr.msra.gmra.mrb[20].mxu1 %v734_v34 }
 0x128   :  { %v537_v63 = vadd.f32 %v1213_v40, %v1628_v7  ;;  %1296 = vmatpush3.bf16.msra.mxu1 %v1295_v35  ;;  %v531_v42 = vpop.f32.mrb[37].mxu0  ;;  %819 = vmatprep.mubr.f32.mxu1 %v739_v37 }
 0x129   :  { %v1299_v46 = vpack.c.bf16 %v705_v38, %v704_v39  ;;  %v532_v59 = vadd.f32 %v1628_v7, %v531_v42  ;;  %1298 = vmatprep.subr.bf16.mxu1 %v1663_v10 }
 0x12a   :  { %v707_v49 = vmax.f32 %v537_v63, 0.0 }
 0x12b   :  { %v706_v22 = vmax.f32 %v532_v59, 0.0  ;;  %v1216_v51 = vpop.f32.mrb[38].mxu0  ;;  %820 = vmatmul.mubr.f32.gmra.mrb[22].mxu1 %v738_v44 }
 0x12c   :  { %v547_v52 = vadd.f32 %v1216_v51, %v1628_v7  ;;  %1300 = vmatpush3.bf16.msra.mxu1 %v1299_v46  ;;  %v541_v53 = vpop.f32.mrb[39].mxu0  ;;  %824 = vmatprep.mubr.f32.mxu1 %v743_v48 }
 0x12d   :  { %v1303_v55 = vpack.c.bf16 %v707_v49, %v706_v22  ;;  %v542_v10 = vadd.f32 %v1628_v7, %v541_v53  ;;  %1302 = vmatprep.subr.bf16.mxu1 %v1671_v25 }
 0x12e   :  { %v709_v58 = vmax.f32 %v547_v52, 0.0 }
 0x12f   :  { %v708_v60 = vmax.f32 %v542_v10, 0.0  ;;  %v1219_v61 = vpop.f32.mrb[40].mxu0  ;;  %825 = vmatmul.mubr.f32.gmra.mrb[24].mxu1 %v742_v54 }
 0x130   :  { %v557_v36 = vadd.f32 %v1219_v61, %v1628_v7  ;;  %1304 = vmatpush3.bf16.msra.mxu1 %v1303_v55  ;;  %v551_v62 = vpop.f32.mrb[41].mxu0  ;;  %829 = vmatprep.mubr.f32.mxu1 %v747_v56 }
 0x131   :  { %v1307_v2 = vpack.c.bf16 %v709_v58, %v708_v60  ;;  %v552_v25 = vadd.f32 %v1628_v7, %v551_v62  ;;  %1306 = vmatprep.subr.bf16.mxu1 %v1679_v41 }
 0x132   :  { %v711_v4 = vmax.f32 %v557_v36, 0.0 }
 0x133   :  { %v710_v5 = vmax.f32 %v552_v25, 0.0  ;;  %v1222_v50 = vpop.f32.mrb[42].mxu0  ;;  %830 = vmatmul.mubr.f32.gmra.mrb[26].mxu1 %v746_v1 }
 0x134   :  { %v567_v6 = vadd.f32 %v1222_v50, %v1628_v7  ;;  %1308 = vmatpush3.bf16.msra.mxu1 %v1307_v2  ;;  %v561_v8 = vpop.f32.mrb[43].mxu0  ;;  %899 = vmatprep.mubr.f32.mxu1 %v737_v3 }
 0x135   :  { %v1311_v9 = vpack.c.bf16 %v711_v4, %v710_v5  ;;  %v562_v12 = vadd.f32 %v1628_v7, %v561_v8  ;;  %1310 = vmatprep.subr.bf16.mxu1 %v1687_v57  ;;  %v736_v7 = vld [vmem:[%s1811_s3 + $0x10] sm:$0xff]  ;;  %v741_v57 = vld [vmem:[%s1811_s3 + $0x38] sm:$0xff] }
 0x136   :  { %v713_v13 = vmax.f32 %v567_v6, 0.0 }
 0x137   :  { %v712_v41 = vmax.f32 %v562_v12, 0.0 }
 0x138   :  { %1312 = vmatpush3.bf16.msra.mxu1 %v1311_v9 }
 0x139   :  { %v1315_v14 = vpack.c.bf16 %v713_v13, %v712_v41  ;;  %1314 = vmatprep.subr.bf16.mxu1 %v1695_v11  ;;  %v740_v11 = vld [vmem:[%s1811_s3 + $0x30] sm:$0xff] }
 0x13c   :  { %1316 = vmatpush3.bf16.msra.mxu1 %v1315_v14 }
 0x13d   :  { %1318 = vmatprep.subr.bf16.mxu1 %v1701_v28  ;;  %v749_v28 = vld [vmem:[%s1811_s3 + $0x78] sm:$0xff] }
 0x140   :  { %1320 = vmatpush3.bf16.msra.mxu1 %v1639_v31  ;;  %v745_v31 = vld [vmem:[%s1811_s3 + $0x58] sm:$0xff] }
 0x141   :  { %1322 = vmatprep.subr.bf16.mxu1 %v1707_v43  ;;  %v748_v43 = vld [vmem:[%s1811_s3 + $0x70] sm:$0xff] }
 0x144   :  { %1324 = vmatpush3.bf16.msra.mxu1 %v1647_v45  ;;  %v744_v45 = vld [vmem:[%s1811_s3 + $0x50] sm:$0xff] }
 0x147   :  { %900 = vmatmul.mubr.f32.vlgmr.msra.gmra.mrb[28].mxu1 %v736_v7 }
 0x148   :  { %904 = vmatprep.mubr.f32.mxu1 %v741_v57 }
 0x14b   :  { %905 = vmatmul.mubr.f32.gmra.mrb[30].mxu1 %v740_v11 }
 0x14c   :  { %909 = vmatprep.mubr.f32.mxu1 %v745_v31 }
 0x14f   :  { %910 = vmatmul.mubr.f32.gmra.mrb[32].mxu1 %v744_v45 }
 0x150   :  { %914 = vmatprep.mubr.f32.mxu1 %v749_v28 }
 0x153   :  { %915 = vmatmul.mubr.f32.gmra.mrb[34].mxu1 %v748_v43 }
 0x1fa   :  { %v1093_v0 = vpop.f32.mrb[20].mxu1 }
 0x1fb   :  { %v1094_v16 = vpop.f32.mrb[21].mxu1 }
 0x1fc   :  { %v1095_v17 = vadd.f32 %v1094_v16, %v1093_v0 }
 0x1fe   :  { %v1096_v18 = vpop.f32.mrb[22].mxu1 }
 0x1ff   :  { %v1097_v19 = vpop.f32.mrb[23].mxu1 }
 0x200   :  { %v1098_v20 = vadd.f32 %v1097_v19, %v1096_v18 }
 0x202   :  { %v1099_v21 = vpop.f32.mrb[24].mxu1 }
 0x203   :  { %v1100_v15 = vpop.f32.mrb[25].mxu1 }
 0x204   :  { %v1101_v23 = vadd.f32 %v1100_v15, %v1099_v21 }
 0x206   :  { %v1102_v24 = vpop.f32.mrb[26].mxu1 }
 0x207   :  { %v1103_v26 = vpop.f32.mrb[27].mxu1 }
 0x208   :  { %v1104_v27 = vadd.f32 %v1103_v26, %v1102_v24 }
 0x21a   :  { %v1137_v29 = vpop.f32.mrb[28].mxu1 }
 0x21b   :  { %v1138_v32 = vpop.f32.mrb[29].mxu1 }
 0x21c   :  { %v1139_v30 = vadd.f32 %v1138_v32, %v1137_v29 }
 0x21e   :  { %v902_v33 = vadd.f32 %v1139_v30, %v1095_v17  ;;  %v1140_v34 = vpop.f32.mrb[30].mxu1 }
 0x21f   :  { %v1141_v35 = vpop.f32.mrb[31].mxu1 }
 0x220   :  { %920 = vst.msk [vmem:[%s1813_s4] sm:$0xff] %vm92_vm0, %v902_v33  ;;  %v1142_v47 = vadd.f32 %v1141_v35, %v1140_v34 }
 0x222   :  { %v907_v37 = vadd.f32 %v1142_v47, %v1098_v20  ;;  %v1143_v38 = vpop.f32.mrb[32].mxu1 }
 0x223   :  { %v1144_v39 = vpop.f32.mrb[33].mxu1 }
 0x224   :  { %921 = vst.msk [vmem:[%s1813_s4 + $0x8] sm:$0xff] %vm92_vm0, %v907_v37  ;;  %v1145_v40 = vadd.f32 %v1144_v39, %v1143_v38 }
 0x226   :  { %v912_v63 = vadd.f32 %v1145_v40, %v1101_v23  ;;  %v1146_v42 = vpop.f32.mrb[34].mxu1 }
 0x227   :  { %v1147_v44 = vpop.f32.mrb[35].mxu1 }
 0x228   :  { %922 = vst.msk [vmem:[%s1813_s4 + $0x10] sm:$0xff] %vm92_vm0, %v912_v63  ;;  %v1148_v46 = vadd.f32 %v1147_v44, %v1146_v42 }
 0x22a   :  { %v917_v59 = vadd.f32 %v1148_v46, %v1104_v27 }
 0x22c   :  { %923 = vst.msk [vmem:[%s1813_s4 + $0x18] sm:$0xff] %vm92_vm0, %v917_v59 }

// kernel: net_forward.3
= control target key start
LH: loop header
LB: loop body
LE: loop exit
PB: predicated region body
PF: predicated region fallthrough
CT: control target
= control target key end

     0   :  { %s3213_s29 = smov 0   ;;  %s3983_s0 = inlined_call_operand.vmem [shape: f32[7,8,128], index: 0, kind: input, shape index: {}]   ;;  %s3984_s1 = inlined_call_operand.vmem [shape: f32[8,16,32], index: 1, kind: input, shape index: {}]   ;;  %s3985_s2 = inlined_call_operand.vmem [shape: s32[8,1], index: 2, kind: input, shape index: {}]   ;;  %s3986_s3 = inlined_call_operand.vmem [shape: f32[7,8,128], index: 3, kind: input, shape index: {}]   ;;  %s3987_s4 = inlined_call_operand.vmem [shape: f32[7,8,16], index: 4, kind: input, shape index: {}]   ;;  %s3988_s5 = inlined_call_operand.vmem [shape: f32[32,32], index: 5, kind: input, shape index: {}]   ;;  %s3989_s6 = inlined_call_operand.vmem [shape: f32[1,32], index: 6, kind: input, shape index: {}]   ;;  %s3990_s7 = inlined_call_operand.vmem [shape: f32[32,32], index: 7, kind: input, shape index: {}]   ;;  %s3991_s8 = inlined_call_operand.vmem [shape: f32[1,32], index: 8, kind: input, shape index: {}]   ;;  %s3992_s9 = inlined_call_operand.vmem [shape: f32[32,32], index: 9, kind: input, shape index: {}]   ;;  %s3993_s10 = inlined_call_operand.vmem [shape: f32[1,32], index: 10, kind: input, shape index: {}]   ;;  %s3994_s11 = inlined_call_operand.vmem [shape: f32[32,32], index: 11, kind: input, shape index: {}]   ;;  %s3995_s12 = inlined_call_operand.vmem [shape: f32[1,32], index: 12, kind: input, shape index: {}]   ;;  %s3996_s13 = inlined_call_operand.vmem [shape: f32[1,32], index: 13, kind: input, shape index: {}]   ;;  %s3997_s14 = inlined_call_operand.<no memory space> [shape: f32[1,1], index: 14, kind: input, shape index: {}]   ;;  %s3998_s15 = inlined_call_operand.vmem [shape: f32[32,32], index: 15, kind: input, shape index: {}]   ;;  %s3999_s16 = inlined_call_operand.vmem [shape: f32[1,32], index: 16, kind: input, shape index: {}]   ;;  %s4000_s17 = inlined_call_operand.vmem [shape: f32[32,128], index: 17, kind: input, shape index: {}]   ;;  %s4001_s18 = inlined_call_operand.vmem [shape: f32[32,128], index: 18, kind: input, shape index: {}]   ;;  %s4002_s19 = inlined_call_operand.vmem [shape: f32[32,128], index: 19, kind: input, shape index: {}]   ;;  %s4003_s20 = inlined_call_operand.vmem [shape: f32[1,128], index: 20, kind: input, shape index: {}]   ;;  %s4004_s21 = inlined_call_operand.vmem [shape: f32[7,8,128], index: 21, kind: output, shape index: {0}]   ;;  %s4005_s22 = inlined_call_operand.vmem [shape: f32[7,8,16], index: 22, kind: output, shape index: {1}]  }
   0x1   :  { %4019 = sst [smem:[#allocation7_spill]] %s3983_s0  ;;  %v28_v0 = vstv %s3997_s14 }
   0x2   :  { %4020 = sst [smem:[#allocation8_spill]] %s3984_s1  ;;  %29 = vst [vmem:[#allocation5] sm:$0x1] %v28_v0 }
   0x3   :  { %4021 = sst [smem:[#allocation9_spill]] %s3985_s2 }
   0x4   :  { %4022 = sst [smem:[#allocation10_spill]] %s3986_s3 }
   0x5   :  { %4023 = sst [smem:[#allocation11_spill]] %s3987_s4 }
   0x6   :  { %4024 = sst [smem:[#allocation12_spill]] %s3988_s5 }
   0x7   :  { %4025 = sst [smem:[#allocation13_spill]] %s3989_s6 }
   0x8   :  { %4026 = sst [smem:[#allocation14_spill]] %s3999_s16 }
   0x9   :  { %4027 = sst [smem:[#allocation15_spill]] %s4000_s17 }
   0xa   :  { %4028 = sst [smem:[#allocation16_spill]] %s4001_s18 }
   0xb   :  { %4029 = sst [smem:[#allocation17_spill]] %s4002_s19 }
   0xc   :  { %4030 = sst [smem:[#allocation18_spill]] %s4003_s20 }
   0xd LB: > { %4031 = sst [smem:[#allocation6_spill]] %s3082_s29  ;;  %s3219_s30 = sadd.s32 4294967295, %s3082_s29   ;;  %s3082_s29 = sphi %s3213_s29, %s35_s29  }
   0xe   : > { %p2731_p0 = scmp.ge.s32.totalorder %s3082_s29, 1  ;;  %p634_p1 = scmp.lt.s32.totalorder %s3082_s29, 8 }
  0x10   : > { %p635_p2 = pnand %p2731_p0, %p634_p1 }
  0x11   : > { %p706_p3 = scmp.lt.s32.totalorder (!%p635_p2), %s3219_s30, 6  ;;  %s4032_s0 = sld [smem:[#allocation8_spill]] (!%p635_p2) }
  0x12   : > { %638 = sbr.rel (%p635_p2) target bundleno = 2342 (0x926), region = 104  ;;  %s4033_s26 = sld [smem:[#allocation7_spill]] (!%p635_p2) }
  0x13   : > { %s4035_s19 = sld [smem:[#allocation11_spill]] (!%p635_p2)  ;;  %p2737_p4 = scmp.ne.s32.totalorder (!%p635_p2), %s3219_s30, 0 }
  0x17   : > { %v3227_v1 = vld [vmem:[%s4032_s0] sm:$0xff] (!%p635_p2)  ;;  %v3232_v2 = vld [vmem:[%s4032_s0 + $0x8] sm:$0xff] (!%p635_p2)  ;;  %v3237_v3 = vld [vmem:[%s4032_s0 + $0x10] sm:$0xff] (!%p635_p2) }
  0x18   : > { %v3242_v4 = vld [vmem:[%s4032_s0 + $0x18] sm:$0xff] (!%p635_p2)  ;;  %v3247_v5 = vld [vmem:[%s4032_s0 + $0x20] sm:$0xff] (!%p635_p2)  ;;  %v3252_v6 = vld [vmem:[%s4032_s0 + $0x28] sm:$0xff] (!%p635_p2) }
  0x19   : > { %s707_s28 = scalar_select %p706_p3, %s3219_s30, 6  ;;  %v3258_v7 = vld [vmem:[%s4032_s0 + $0x30] sm:$0xff]  ;;  %v3263_v8 = vld [vmem:[%s4032_s0 + $0x38] sm:$0xff]  ;;  %v3268_v9 = vld [vmem:[%s4032_s0 + $0x40] sm:$0xff] }
  0x1a   : > { %v3273_v10 = vld [vmem:[%s4032_s0 + $0x48] sm:$0xff]  ;;  %v3278_v11 = vld [vmem:[%s4032_s0 + $0x50] sm:$0xff]  ;;  %v3283_v12 = vld [vmem:[%s4032_s0 + $0x58] sm:$0xff]  ;;  %745 = sbr.rel (%p2737_p4) target bundleno = 295 (0x127), region = 108  ;;  %s4036_s20 = sld [smem:[#allocation12_spill]] (!%p2737_p4)  ;;  %v3084_v20 = vmov (!%p2737_p4), 0.0|0.0  }
  0x1b   : > { %s3285_s14 = sshll.u32 %s707_s28, 3  ;;  %v3290_v13 = vld [vmem:[%s4032_s0 + $0x60] sm:$0xff]  ;;  %v3295_v14 = vld [vmem:[%s4032_s0 + $0x68] sm:$0xff]  ;;  %v3300_v15 = vld [vmem:[%s4032_s0 + $0x70] sm:$0xff]  ;;  %2937 = vmatprep.subr.bf16.mxu0 (!%p2737_p4), %v3084_v20  ;;  %2943 = vmatprep.subr.bf16.mxu1 (!%p2737_p4), %v3084_v20  ;;  %vm746_vm0 = vcmask (!%p2737_p4), 261120   ;;  %vm3085_vm1 = vmmov (!%p2737_p4), 0  }
  0x1c   : > { %s709_s2 = scalar_lea.vmem %s4033_s26, %s3285_s14  ;;  %v3313_v16 = vld [vmem:[%s4032_s0 + $0x78] sm:$0xff]  ;;  %s717_s18 = scalar_lea.vmem %s4035_s19, %s3285_s14  ;;  %v934_v19 = vld [vmem:[%s3990_s7] sm:$0xff] (!%p2737_p4)  ;;  %v935_v22 = vld [vmem:[%s3990_s7 + $0x8] sm:$0xff] (!%p2737_p4)  ;;  %v3086_v29 = vmov (!%p2737_p4), 0.0   ;;  %v747_v31 = vsel (!%p2737_p4), %vm746_vm0, %v3227_v1, 0.0  ;;  %v748_v32 = vsel (!%p2737_p4), %vm746_vm0, %v3232_v2, 0.0 }
  0x1d   : > { %s725_s25 = scalar_lea.vmem %s4005_s22, %s3285_s14  ;;  %v2944_v25 = vpack.c.bf16 (!%p2737_p4), %v935_v22, %v934_v19  ;;  %v936_v27 = vld [vmem:[%s3990_s7 + $0x10] sm:$0xff] (!%p2737_p4)  ;;  %v937_v28 = vld [vmem:[%s3990_s7 + $0x18] sm:$0xff] (!%p2737_p4)  ;;  %2836 = vmatprep.mubr.msk.f32.mxu0 (!%p2737_p4), %vm3085_vm1, %v3086_v29  ;;  %2847 = vmatprep.mubr.msk.f32.mxu1 (!%p2737_p4), %vm3085_vm1, %v3086_v29  ;;  %v1016_v30 = vld [vmem:[%s3992_s9] sm:$0xff] (!%p2737_p4)  ;;  %v749_v35 = vadd.f32 (!%p2737_p4), %v748_v32, %v747_v31  ;;  %v756_v36 = vsel (!%p2737_p4), %vm746_vm0, %v3237_v3, 0.0  ;;  %v757_v37 = vsel (!%p2737_p4), %vm746_vm0, %v3242_v4, 0.0  ;;  %s4037_s29 = sld [smem:[#allocation13_spill]] (!%p2737_p4) }
  0x1e   : > { %v2947_v33 = vpack.c.bf16 (!%p2737_p4), %v937_v28, %v936_v27  ;;  %v1017_v34 = vld [vmem:[%s3992_s9 + $0x8] sm:$0xff] (!%p2737_p4)  ;;  %v758_v39 = vadd.f32 (!%p2737_p4), %v757_v37, %v756_v36  ;;  %v765_v40 = vsel (!%p2737_p4), %vm746_vm0, %v3247_v5, 0.0  ;;  %v766_v41 = vsel (!%p2737_p4), %vm746_vm0, %v3252_v6, 0.0 }
  0x1f   : > { %2945 = vmatpush3.bf16.msra.mxu1 (!%p2737_p4), %v2944_v25  ;;  %v3366_v38 = vpack.c.bf16 (!%p2737_p4), %v1017_v34, %v1016_v30  ;;  %v750_v42 = vrot.slane (!%p2737_p4), %v749_v35, 4  ;;  %v767_v43 = vadd.f32 (!%p2737_p4), %v766_v41, %v765_v40  ;;  %v774_v44 = vsel (!%p2737_p4), %vm746_vm0, %v3258_v7, 0.0 }
  0x20   : > { %v828_v17 = vld [vmem:[%s4036_s20] sm:$0xff] (!%p2737_p4)  ;;  %v829_v18 = vld [vmem:[%s4036_s20 + $0x8] sm:$0xff] (!%p2737_p4)  ;;  %v830_v23 = vld [vmem:[%s4036_s20 + $0x10] sm:$0xff] (!%p2737_p4)  ;;  %2946 = vmatprep.subr.bf16.mxu1 (!%p2737_p4), %v3084_v20  ;;  %v775_v45 = vsel (!%p2737_p4), %vm746_vm0, %v3263_v8, 0.0  ;;  %v759_v46 = vrot.slane (!%p2737_p4), %v758_v39, 4  ;;  %v783_v48 = vsel (!%p2737_p4), %vm746_vm0, %v3268_v9, 0.0 }
  0x21   : > { %v2938_v21 = vpack.c.bf16 %v829_v18, %v828_v17  ;;  %v831_v24 = vld [vmem:[%s4036_s20 + $0x18] sm:$0xff]  ;;  %v776_v47 = vadd.f32 %v775_v45, %v774_v44  ;;  %v784_v49 = vsel %vm746_vm0, %v3273_v10, 0.0  ;;  %v751_v50 = vadd.f32 %v750_v42, %v749_v35 }
  0x22   : > { %v2941_v26 = vpack.c.bf16 %v831_v24, %v830_v23  ;;  %v768_v51 = vrot.slane %v767_v43, 4  ;;  %v785_v52 = vadd.f32 %v784_v49, %v783_v48  ;;  %v792_v53 = vsel %vm746_vm0, %v3278_v11, 0.0 }
  0x23   : > { %2939 = vmatpush3.bf16.msra.mxu0 %v2938_v21  ;;  %2948 = vmatpush3.bf16.msra.mxu1 %v2947_v33  ;;  %v760_v54 = vadd.f32 %v759_v46, %v758_v39  ;;  %v777_v55 = vrot.slane %v776_v47, 4  ;;  %v793_v56 = vsel %vm746_vm0, %v3283_v12, 0.0  ;;  %v801_v57 = vsel %vm746_vm0, %v3290_v13, 0.0 }
  0x24   : > { %2940 = vmatprep.subr.bf16.mxu0 %v3084_v20  ;;  %2987 = vmatprep.subr.bf16.mxu1 %v3366_v38  ;;  %v752_v58 = vrot.slane %v751_v50, 2  ;;  %v769_v59 = vadd.f32 %v768_v51, %v767_v43  ;;  %v786_v60 = vrot.slane %v785_v52, 4  ;;  %v794_v61 = vadd.f32 %v793_v56, %v792_v53 }
  0x25   : > { %vm847_vm2 = vcmask 1041409   ;;  %v761_v62 = vrot.slane %v760_v54, 2  ;;  %v778_v63 = vadd.f32 %v777_v55, %v776_v47  ;;  %v802_v0 = vsel %vm746_vm0, %v3295_v14, 0.0 }
  0x26   : > { %v810_v17 = vsel %vm746_vm0, %v3300_v15, 0.0  ;;  %vm849_vm3 = vcmask 1042434   ;;  %v753_v18 = vadd.f32 %v752_v58, %v751_v50  ;;  %v770_v19 = vrot.slane %v769_v59, 2 }
  0x27   : > { %2942 = vmatpush3.bf16.msra.mxu0 %v2941_v26  ;;  %v787_v20 = vadd.f32 %v786_v60, %v785_v52  ;;  %v795_v21 = vrot.slane %v794_v61, 4  ;;  %v762_v22 = vadd.f32 %v761_v62, %v760_v54  ;;  %v779_v23 = vrot.slane %v778_v63, 2 }
  0x28   : > { %2950 = vmatprep.subr.bf16.mxu0 %v3366_v38  ;;  %v803_v24 = vadd.f32 %v802_v0, %v801_v57  ;;  %v811_v25 = vsel %vm746_vm0, %v3313_v16, 0.0  ;;  %v754_v26 = vrot.slane %v753_v18, 1  ;;  %v771_v27 = vadd.f32 %v770_v19, %v769_v59 }
  0x29   : > { %v788_v28 = vrot.slane %v787_v20, 2  ;;  %v796_v29 = vadd.f32 %v795_v21, %v794_v61  ;;  %v763_v30 = vrot.slane %v762_v22, 1  ;;  %v780_v31 = vadd.f32 %v779_v23, %v778_v63  ;;  %v1018_v23 = vld [vmem:[%s3992_s9 + $0x10] sm:$0xff] }
  0x2a   : > { %v804_v32 = vrot.slane %v803_v24, 4  ;;  %v812_v33 = vadd.f32 %v811_v25, %v810_v17  ;;  %v755_v34 = vadd.f32 %v754_v26, %v753_v18  ;;  %v772_v35 = vrot.slane %v771_v27, 1 }
  0x2b   : > { %v789_v36 = vadd.f32 %v788_v28, %v787_v20  ;;  %v797_v37 = vrot.slane %v796_v29, 2  ;;  %v764_v39 = vadd.f32 %v763_v30, %v762_v22  ;;  %v781_v40 = vrot.slane %v780_v31, 1 }
  0x2c   : > { %v805_v41 = vadd.f32 %v804_v32, %v803_v24  ;;  %v813_v42 = vrot.slane %v812_v33, 4  ;;  %v773_v43 = vadd.f32 %v772_v35, %v771_v27  ;;  %v820_v46 = vmul.f32 0.0625, %v755_v34  ;;  %v1019_v24 = vld [vmem:[%s3992_s9 + $0x18] sm:$0xff] }
  0x2d   : > { %v790_v44 = vrot.slane %v789_v36, 1  ;;  %v798_v45 = vadd.f32 %v797_v37, %v796_v29  ;;  %v782_v47 = vadd.f32 %v781_v40, %v780_v31  ;;  %v821_v50 = vmul.f32 0.0625, %v764_v39  ;;  %v2740_v29 = vld [vmem:[%s3991_s8] ss:$0 sm:$0xff] }
  0x2e   : > { %v806_v48 = vrot.slane %v805_v41, 2  ;;  %v814_v49 = vadd.f32 %v813_v42, %v812_v33  ;;  %v822_v53 = vmul.f32 0.0625, %v773_v43  ;;  %vm851_vm4 = vcmask 1043459  }
  0x2f   : > { %v791_v51 = vadd.f32 %v790_v44, %v789_v36  ;;  %v799_v52 = vrot.slane %v798_v45, 1  ;;  %v823_v56 = vmul.f32 0.0625, %v782_v47  ;;  %v848_v57 = vsel %vm847_vm2, %v821_v50, %v820_v46  ;;  %v2742_v36 = vld [vmem:[%s3993_s10] ss:$0 sm:$0xff] }
  0x30   : > { %v807_v54 = vadd.f32 %v806_v48, %v805_v41  ;;  %v815_v55 = vrot.slane %v814_v49, 2  ;;  %v850_v60 = vsel %vm849_vm3, %v822_v53, %v848_v57  ;;  %vm853_vm5 = vcmask 1044484  }
  0x31   : > { %v800_v58 = vadd.f32 %v799_v52, %v798_v45  ;;  %v824_v59 = vmul.f32 0.0625, %v791_v51  ;;  %v852_v63 = vsel %vm851_vm4, %v823_v56, %v850_v60  ;;  %vm855_vm6 = vcmask 1045509  }
  0x32   : > { %v808_v61 = vrot.slane %v807_v54, 1  ;;  %v816_v62 = vadd.f32 %v815_v55, %v814_v49  ;;  %vm857_vm7 = vcmask 1046534   ;;  %vm859_vm8 = vcmask 1047559  }
  0x33   : > { %v825_v0 = vmul.f32 0.0625, %v800_v58  ;;  %v854_v17 = vsel %vm853_vm5, %v824_v59, %v852_v63  ;;  %v2953_v27 = vpack.c.bf16 %v1019_v24, %v1018_v23 }
  0x34   : > { %v809_v18 = vadd.f32 %v808_v61, %v807_v54  ;;  %v817_v19 = vrot.slane %v816_v62, 1 }
  0x35   : > { %v856_v20 = vsel %vm855_vm6, %v825_v0, %v854_v17 }
  0x36   : > { %v818_v21 = vadd.f32 %v817_v19, %v816_v62  ;;  %v826_v22 = vmul.f32 0.0625, %v809_v18 }
  0x38   : > { %v827_v25 = vmul.f32 0.0625, %v818_v21  ;;  %v858_v26 = vsel %vm857_vm7, %v826_v22, %v856_v20 }
  0x3a   : > { %v860_v28 = vsel %vm859_vm8, %v827_v25, %v858_v26 }
  0x3b   : > { %2837 = vmatmul.mubr.msk.f32.vlgmr.msra.gmra.mrb[0].mxu0 %vm746_vm0, %v860_v28  ;;  %2848 = vmatmul.mubr.msk.f32.vlgmr.msra.gmra.mrb[0].mxu1 %vm746_vm0, %v860_v28 }
  0x3c   : > { %2952 = vmatpush3.bf16.msra.mxu0 %v3366_v38  ;;  %2989 = vmatpush3.bf16.msra.mxu1 %v3366_v38  ;;  %v2738_v38 = vld [vmem:[%s4037_s29] ss:$0 sm:$0xff] }
  0x3d   : > { %2954 = vmatprep.subr.bf16.mxu0 %v2953_v27  ;;  %2988 = vmatprep.subr.bf16.mxu1 %v2953_v27 }
  0x3e   : > { %2858 = vmatprep.mubr.msk.f32.mxu0 %vm746_vm0, %v3227_v1  ;;  %2870 = vmatprep.mubr.msk.f32.mxu1 %vm746_vm0, %v3268_v9 }
  0x40   : > { %2956 = vmatpush3.bf16.msra.mxu0 %v2953_v27  ;;  %2990 = vmatpush3.bf16.msra.mxu1 %v2953_v27 }
  0x43   : > { %2859 = vmatmul.mubr.msk.f32.vlgmr.msra.gmra.mrb[2].mxu0 %vm746_vm0, %v3232_v2  ;;  %2871 = vmatmul.mubr.msk.f32.vlgmr.msra.gmra.mrb[2].mxu1 %vm746_vm0, %v3273_v10 }
  0x44   : > { %2861 = vmatprep.mubr.msk.f32.mxu0 %vm746_vm0, %v3237_v3  ;;  %2873 = vmatprep.mubr.msk.f32.mxu1 %vm746_vm0, %v3278_v11 }
  0x47   : > { %2862 = vmatmul.mubr.msk.f32.gmra.mrb[4].mxu0 %vm746_vm0, %v3242_v4  ;;  %2874 = vmatmul.mubr.msk.f32.gmra.mrb[4].mxu1 %vm746_vm0, %v3283_v12 }
  0x48   : > { %2864 = vmatprep.mubr.msk.f32.mxu0 %vm746_vm0, %v3247_v5  ;;  %2876 = vmatprep.mubr.msk.f32.mxu1 %vm746_vm0, %v3290_v13 }
  0x4b   : > { %2865 = vmatmul.mubr.msk.f32.gmra.mrb[6].mxu0 %vm746_vm0, %v3252_v6  ;;  %2877 = vmatmul.mubr.msk.f32.gmra.mrb[6].mxu1 %vm746_vm0, %v3295_v14 }
  0x4c   : > { %2867 = vmatprep.mubr.msk.f32.mxu0 %vm746_vm0, %v3258_v7  ;;  %2879 = vmatprep.mubr.msk.f32.mxu1 %vm746_vm0, %v3300_v15 }
  0x4f   : > { %2868 = vmatmul.mubr.msk.f32.gmra.mrb[8].mxu0 %vm746_vm0, %v3263_v8  ;;  %2880 = vmatmul.mubr.msk.f32.gmra.mrb[8].mxu1 %vm746_vm0, %v3313_v16 }
 0x10e   : > { %v929_v30 = vpop.f32.mrb[0].mxu0  ;;  %v1011_v31 = vpop.f32.mrb[0].mxu1 }
 0x10f   : > { %v930_v32 = vadd.f32 %v2738_v38, %v929_v30  ;;  %v1012_v33 = vadd.f32 %v2740_v29, %v1011_v31  ;;  %v2838_v34 = vpop.f32.mrb[1].mxu0  ;;  %v2849_v35 = vpop.f32.mrb[1].mxu1 }
 0x111   : > { %933 = vst.msk [vmem:[#allocation2] sm:$0xff] %vm746_vm0, %v930_v32  ;;  %1015 = vst.msk [vmem:[#allocation3] sm:$0xff] %vm746_vm0, %v1012_v33 }
 0x116   : > { %v2860_v37 = vpop.f32.mrb[2].mxu0  ;;  %v2872_v39 = vpop.f32.mrb[2].mxu1 }
 0x117   : > { %v1147_v40 = vadd.f32 %v2860_v37, %v2742_v36  ;;  %v1187_v41 = vadd.f32 %v2872_v39, %v2742_v36  ;;  %v1141_v42 = vpop.f32.mrb[3].mxu0  ;;  %v1181_v43 = vpop.f32.mrb[3].mxu1 }
 0x118   : > { %v1142_v44 = vadd.f32 %v2742_v36, %v1141_v42  ;;  %v1182_v45 = vadd.f32 %v2742_v36, %v1181_v43 }
 0x119   : > { %1221 = vst.msk [vmem:[#allocation4 + $0x8] sm:$0xff] %vm746_vm0, %v1147_v40  ;;  %1229 = vst.msk [vmem:[#allocation4 + $0x48] sm:$0xff] %vm746_vm0, %v1187_v41 }
 0x11a   : > { %1220 = vst.msk [vmem:[#allocation4] sm:$0xff] %vm746_vm0, %v1142_v44  ;;  %1228 = vst.msk [vmem:[#allocation4 + $0x40] sm:$0xff] %vm746_vm0, %v1182_v45  ;;  %v2863_v46 = vpop.f32.mrb[4].mxu0  ;;  %v2875_v47 = vpop.f32.mrb[4].mxu1 }
 0x11b   : > { %v1157_v48 = vadd.f32 %v2863_v46, %v2742_v36  ;;  %v1197_v49 = vadd.f32 %v2875_v47, %v2742_v36  ;;  %v1151_v50 = vpop.f32.mrb[5].mxu0  ;;  %v1191_v51 = vpop.f32.mrb[5].mxu1 }
 0x11c   : > { %v1152_v52 = vadd.f32 %v2742_v36, %v1151_v50  ;;  %v1192_v53 = vadd.f32 %v2742_v36, %v1191_v51 }
 0x11d   : > { %1223 = vst.msk [vmem:[#allocation4 + $0x18] sm:$0xff] %vm746_vm0, %v1157_v48  ;;  %1231 = vst.msk [vmem:[#allocation4 + $0x58] sm:$0xff] %vm746_vm0, %v1197_v49 }
 0x11e   : > { %1222 = vst.msk [vmem:[#allocation4 + $0x10] sm:$0xff] %vm746_vm0, %v1152_v52  ;;  %1230 = vst.msk [vmem:[#allocation4 + $0x50] sm:$0xff] %vm746_vm0, %v1192_v53  ;;  %v2866_v54 = vpop.f32.mrb[6].mxu0  ;;  %v2878_v55 = vpop.f32.mrb[6].mxu1 }
 0x11f   : > { %v1167_v56 = vadd.f32 %v2866_v54, %v2742_v36  ;;  %v1207_v57 = vadd.f32 %v2878_v55, %v2742_v36  ;;  %v1161_v58 = vpop.f32.mrb[7].mxu0  ;;  %v1201_v59 = vpop.f32.mrb[7].mxu1 }
 0x120   : > { %v1162_v60 = vadd.f32 %v2742_v36, %v1161_v58  ;;  %v1202_v61 = vadd.f32 %v2742_v36, %v1201_v59 }
 0x121   : > { %1225 = vst.msk [vmem:[#allocation4 + $0x28] sm:$0xff] %vm746_vm0, %v1167_v56  ;;  %1233 = vst.msk [vmem:[#allocation4 + $0x68] sm:$0xff] %vm746_vm0, %v1207_v57 }
 0x122   : > { %1224 = vst.msk [vmem:[#allocation4 + $0x20] sm:$0xff] %vm746_vm0, %v1162_v60  ;;  %1232 = vst.msk [vmem:[#allocation4 + $0x60] sm:$0xff] %vm746_vm0, %v1202_v61  ;;  %v2869_v62 = vpop.f32.mrb[8].mxu0  ;;  %v2881_v63 = vpop.f32.mrb[8].mxu1 }
 0x123   : > { %v1177_v0 = vadd.f32 %v2869_v62, %v2742_v36  ;;  %v1217_v17 = vadd.f32 %v2881_v63, %v2742_v36  ;;  %v1171_v18 = vpop.f32.mrb[9].mxu0  ;;  %v1211_v19 = vpop.f32.mrb[9].mxu1 }
 0x124   : > { %v1172_v20 = vadd.f32 %v2742_v36, %v1171_v18  ;;  %v1212_v21 = vadd.f32 %v2742_v36, %v1211_v19 }
 0x125   : > { %1227 = vst.msk [vmem:[#allocation4 + $0x38] sm:$0xff] %vm746_vm0, %v1177_v0  ;;  %1235 = vst.msk [vmem:[#allocation4 + $0x78] sm:$0xff] %vm746_vm0, %v1217_v17 }
 0x126   : > { %1226 = vst.msk [vmem:[#allocation4 + $0x30] sm:$0xff] %vm746_vm0, %v1172_v20  ;;  %1234 = vst.msk [vmem:[#allocation4 + $0x70] sm:$0xff] %vm746_vm0, %v1212_v21 }
 0x127 PF: > { %v1238_v22 = vld [vmem:[%s3994_s11] sm:$0xff]  ;;  %v1239_v23 = vld [vmem:[%s3994_s11 + $0x8] sm:$0xff]  ;;  %v1240_v24 = vld [vmem:[%s3994_s11 + $0x10] sm:$0xff]  ;;  %v4014_v25 = vmov 0.0|0.0   ;;  %vm3088_vm9 = vmmov 0   ;;  %v4013_v28 = vmov 0.0   ;;  %v1344_v33 = vlaneseq }
 0x128   : > { %2957 = vmatprep.subr.bf16.mxu0 %v4014_v25  ;;  %v2958_v26 = vpack.c.bf16 %v1239_v23, %v1238_v22  ;;  %v1241_v27 = vld [vmem:[%s3994_s11 + $0x18] sm:$0xff]  ;;  %2890 = vmatprep.mubr.msk.f32.mxu0 %vm3088_vm9, %v4013_v28  ;;  %v3484_v29 = vld [vmem:[#allocation2] sm:$0xff]  ;;  %vm1249_vm10 = vcmask 261120   ;;  %v4012_v30 = vmov 0   ;;  %v3091_v31 = vmov 1966171168  }
 0x129   : > { %2963 = vmatprep.subr.bf16.mxu1 %v4014_v25  ;;  %2901 = vmatprep.mubr.msk.f32.mxu1 %vm3088_vm9, %v4013_v28  ;;  %v2961_v38 = vpack.c.bf16 %v1241_v27, %v1240_v24  ;;  %v1342_v32 = vunpack.c.l.s4 %v3091_v31  ;;  %v3494_v35 = vshrl.u32 %v1344_v33, 7  ;;  %v2759_v36 = vld [vmem:[%s3995_s12] ss:$0 sm:$0xff]  ;;  %v1323_v51 = vld [vmem:[#allocation4] sm:$0xff]  ;;  %v1324_v52 = vld [vmem:[#allocation4 + $0x8] sm:$0xff]  ;;  %vm1585_vm11 = vcmask 130112  }
 0x12a   : > { %2959 = vmatpush3.bf16.msra.mxu0 %v2958_v26  ;;  %3013 = vset.pattern.permute.xlu0 %v4012_v30  ;;  %v1325_v54 = vld [vmem:[#allocation4 + $0x10] sm:$0xff]  ;;  %v1326_v55 = vld [vmem:[#allocation4 + $0x18] sm:$0xff]  ;;  %v1327_v57 = vld [vmem:[#allocation4 + $0x20] sm:$0xff]  ;;  %vm1650_vm12 = vcmask 1041409   ;;  %vm1652_vm13 = vcmask 1042434   ;;  %vm1654_vm14 = vcmask 1043459  }
 0x12b   : > { %2960 = vmatprep.subr.bf16.mxu0 %v4014_v25  ;;  %3014 = vset.pattern.permute.xlu1 %v4012_v30  ;;  %v1343_v34 = vunpack.c.0.s8 %v1342_v32  ;;  %v3501_v44 = vsub.s32 0, %v3494_v35  ;;  %v1328_v61 = vld [vmem:[#allocation4 + $0x28] sm:$0xff]  ;;  %v3511_v63 = vld [vmem:[%s3996_s13] ss:$0 sm:$0xff]  ;;  %v1331_v23 = vld [vmem:[#allocation4 + $0x40] sm:$0xff]  ;;  %vm1656_vm15 = vcmask 1044484  }
 0x12c   : > { %v1332_v31 = vld [vmem:[#allocation4 + $0x48] sm:$0xff]  ;;  %vm1658_vm0 = vcmask 1045509   ;;  %vm1660_vm1 = vcmask 1046534   ;;  %vm1662_vm2 = vcmask 1047559   ;;  %vm1665_vm3 = vcmask 130048   ;;  %s4041_s4 = sld [smem:[#allocation15_spill]] }
 0x12d   : > { %v1346_v37 = vsub.s32 %v1343_v34, %v3494_v35  ;;  %s3092_s26 = smov 32   ;;  %s4043_s3 = sld [smem:[#allocation14_spill]] }
 0x12e   : > { %2962 = vmatpush3.bf16.msra.mxu0 %v2961_v38  ;;  %s4044_s1 = sld [smem:[#allocation16_spill]]  ;;  %s3093_s5 = smov 64  }
 0x12f   : > { %2969 = vmatprep.subr.bf16.mxu0 %v4014_v25  ;;  %s4047_s6 = sld [smem:[#allocation9_spill]]  ;;  %s4053_s17 = sld [smem:[#allocation10_spill]] }
 0x130   : > { %s4049_s29 = sld [smem:[#allocation17_spill]] }
 0x131   : > { %2891 = vmatmul.mubr.msk.f32.vlgmr.msra.gmra.mrb[0].mxu0 %vm1249_vm10, %v3484_v29 }
 0x132   : > { %2912 = vmatprep.mubr.msk.f32.mxu0 %vm3088_vm9, %v4013_v28 }
 0x204   : > { %v1319_v39 = vpop.f32.mrb[0].mxu0 }
 0x205   : > { %v1320_v40 = vadd.f32 %v2759_v36, %v1319_v39  ;;  %v2892_v41 = vpop.f32.mrb[1].mxu0 }
 0x207   : > { %v1340_v42 = vcombine.high %v1320_v40, %v1320_v40  ;;  %v1347_v43 = vrot.slane %v1320_v40, %v1346_v37 }
 0x209   : > { %v1354_v45 = vrot.slane %v1340_v42, %v1346_v37  ;;  %v1355_v46 = vcombine.high %v1347_v43, %v1347_v43  ;;  %v1363_v47 = vrot.slane %v1347_v43, %v1346_v37 }
 0x20b   : > { %v3503_v48 = vrot.slane %v1354_v45, %v1346_v37  ;;  %v1377_v49 = vrot.slane %v1355_v46, %v1346_v37  ;;  %v1385_v50 = vcombine.high %v1363_v47, %v1363_v47  ;;  %v1392_v53 = vrot.slane %v1363_v47, %v3501_v44 }
 0x20c   : > { %v1356_v62 = vcombine.high %v1354_v45, %v1354_v45 }
 0x20d   : > { %v1396_v56 = vrot.slane %v1377_v49, %v3501_v44  ;;  %v1429_v58 = vadd.f32 %v1392_v53, %v1323_v51  ;;  %v1430_v59 = vadd.f32 %v1392_v53, %v1324_v52  ;;  %v1400_v60 = vrot.slane %v1385_v50, %v3501_v44  ;;  %v1330_v50 = vld [vmem:[#allocation4 + $0x38] sm:$0xff] }
 0x20e   : > { %v1408_v18 = vrot.slane %v3503_v48, %v3501_v44  ;;  %v1387_v19 = vcombine.high %v1377_v49, %v1377_v49  ;;  %v1384_v39 = vrot.slane %v1356_v62, %v1346_v37  ;;  %v1329_v49 = vld [vmem:[#allocation4 + $0x30] sm:$0xff]  ;;  %v1386_v37 = vcombine.high %v3503_v48, %v3503_v48 }
 0x20f   : > { %v1431_v0 = vadd.f32 %v1396_v56, %v1325_v54  ;;  %v1432_v17 = vadd.f32 %v1396_v56, %v1326_v55  ;;  %v1445_v20 = vmax.f32 %v1429_v58, 0.0  ;;  %v1446_v21 = vmax.f32 %v1430_v59, 0.0 }
 0x210   : > { %v1433_v22 = vadd.f32 %v1400_v60, %v1327_v57  ;;  %v1434_v27 = vadd.f32 %v1400_v60, %v1328_v61  ;;  %v1437_v36 = vadd.f32 %v1408_v18, %v1331_v23  ;;  %v1404_v42 = vrot.slane %v1387_v19, %v3501_v44  ;;  %v1333_v60 = vld [vmem:[#allocation4 + $0x50] sm:$0xff]  ;;  %v1334_v61 = vld [vmem:[#allocation4 + $0x58] sm:$0xff] }
 0x211   : > { %v1447_v24 = vmax.f32 %v1431_v0, 0.0  ;;  %v1448_v26 = vmax.f32 %v1432_v17, 0.0  ;;  %v1468_v38 = vmul.f32 %v3511_v63, %v1445_v20  ;;  %v1469_v41 = vmul.f32 %v3511_v63, %v1446_v21 }
 0x212   : > { %v1449_v34 = vmax.f32 %v1433_v22, 0.0  ;;  %v1450_v46 = vmax.f32 %v1434_v27, 0.0  ;;  %v1438_v47 = vadd.f32 %v1408_v18, %v1332_v31  ;;  %v1453_v52 = vmax.f32 %v1437_v36, 0.0 }
 0x213   : > { %v1470_v32 = vmul.f32 %v3511_v63, %v1447_v24  ;;  %v1484_v40 = vsel %vm1249_vm10, %v1468_v38, 0.0  ;;  %v1471_v45 = vmul.f32 %v3511_v63, %v1448_v26  ;;  %v1487_v53 = vsel %vm1249_vm10, %v1469_v41, 0.0  ;;  %v1335_v24 = vld [vmem:[#allocation4 + $0x60] sm:$0xff]  ;;  %v1336_v26 = vld [vmem:[#allocation4 + $0x68] sm:$0xff] }
 0x214   : > { %1485 = vadd.xlane.f32.xlu0 %v1484_v40  ;;  %v1472_v51 = vmul.f32 %v3511_v63, %v1449_v34  ;;  %v1435_v54 = vadd.f32 %v1404_v42, %v1329_v49  ;;  %v1412_v55 = vrot.slane %v1384_v39, %v3501_v44  ;;  %v1473_v57 = vmul.f32 %v3511_v63, %v1450_v46 }
 0x215   : > { %v1490_v43 = vsel %vm1249_vm10, %v1470_v32, 0.0  ;;  %v1493_v56 = vsel %vm1249_vm10, %v1471_v45, 0.0  ;;  %v1454_v58 = vmax.f32 %v1438_v47, 0.0  ;;  %v1436_v59 = vadd.f32 %v1404_v42, %v1330_v50  ;;  %v1337_v42 = vld [vmem:[#allocation4 + $0x70] sm:$0xff] }
 0x216   : > { %1491 = vadd.xlane.f32.xlu1 %v1490_v43  ;;  %v1496_v62 = vsel %vm1249_vm10, %v1472_v51, 0.0  ;;  %v1476_v0 = vmul.f32 %v3511_v63, %v1453_v52  ;;  %v1451_v48 = vmax.f32 %v1435_v54, 0.0  ;;  %v1439_v17 = vadd.f32 %v1412_v55, %v1333_v60  ;;  %v1338_v43 = vld [vmem:[#allocation4 + $0x78] sm:$0xff] }
 0x217   : > { %v1416_v18 = vrot.slane %v1386_v37, %v3501_v44  ;;  %v1388_v19 = vcombine.high %v1384_v39, %v1384_v39  ;;  %v1499_v20 = vsel %vm1249_vm10, %v1473_v57, 0.0  ;;  %v1477_v21 = vmul.f32 %v3511_v63, %v1454_v58 }
 0x218   : > { %1488 = vadd.xlane.f32.xlu0 %v1487_v53  ;;  %v1452_v22 = vmax.f32 %v1436_v59, 0.0  ;;  %v1440_v23 = vadd.f32 %v1412_v55, %v1334_v61  ;;  %v1508_v27 = vsel %vm1249_vm10, %v1476_v0, 0.0  ;;  %v1474_v38 = vmul.f32 %v3511_v63, %v1451_v48 }
 0x219   : > { %v1455_v31 = vmax.f32 %v1439_v17, 0.0  ;;  %v1441_v32 = vadd.f32 %v1416_v18, %v1335_v24  ;;  %v1420_v34 = vrot.slane %v1388_v19, %v3501_v44  ;;  %v1511_v36 = vsel %vm1249_vm10, %v1477_v21, 0.0  ;;  %v2762_v17 = vld [vmem:[#allocation5] ss:$0 sm:$0xff] }
 0x21a   : > { %1494 = vadd.xlane.f32.xlu1 %v1493_v56  ;;  %v1475_v39 = vmul.f32 %v3511_v63, %v1452_v22  ;;  %v1456_v40 = vmax.f32 %v1440_v23, 0.0  ;;  %v1442_v41 = vadd.f32 %v1416_v18, %v1336_v26  ;;  %v1502_v45 = vsel %vm1249_vm10, %v1474_v38, 0.0 }
 0x21b   : > { %v1478_v46 = vmul.f32 %v3511_v63, %v1455_v31  ;;  %v1457_v47 = vmax.f32 %v1441_v32, 0.0  ;;  %v1443_v49 = vadd.f32 %v1420_v34, %v1337_v42  ;;  %v1444_v37 = vadd.f32 %v1420_v34, %v1338_v43 }
 0x21c   : > { %1497 = vadd.xlane.f32.xlu0 %v1496_v62  ;;  %v1505_v50 = vsel %vm1249_vm10, %v1475_v39, 0.0  ;;  %v1479_v51 = vmul.f32 %v3511_v63, %v1456_v40  ;;  %v1458_v52 = vmax.f32 %v1442_v41, 0.0  ;;  %v1575_v32 = vand.u32 127, %v1344_v33 }
 0x21d   : > { %v1514_v53 = vsel %vm1249_vm10, %v1478_v46, 0.0  ;;  %v1480_v54 = vmul.f32 %v3511_v63, %v1457_v47  ;;  %v1459_v55 = vmax.f32 %v1443_v49, 0.0  ;;  %v1460_v58 = vmax.f32 %v1444_v37, 0.0 }
 0x21e   : > { %1500 = vadd.xlane.f32.xlu1 %v1499_v20  ;;  %v1517_v56 = vsel %vm1249_vm10, %v1479_v51, 0.0  ;;  %v1481_v57 = vmul.f32 %v3511_v63, %v1458_v52  ;;  %v3555_v41 = vsub.s32 %v1575_v32, %v3494_v35 }
 0x21f   : > { %v1520_v59 = vsel %vm1249_vm10, %v1480_v54, 0.0  ;;  %v1482_v60 = vmul.f32 %v3511_v63, %v1459_v55  ;;  %v1483_v62 = vmul.f32 %v3511_v63, %v1460_v58 }
 0x220   : > { %1509 = vadd.xlane.f32.xlu0 %v1508_v27  ;;  %v1523_v61 = vsel %vm1249_vm10, %v1481_v57, 0.0 }
 0x221   : > { %v1526_v0 = vsel %vm1249_vm10, %v1482_v60, 0.0  ;;  %v1529_v48 = vsel %vm1249_vm10, %v1483_v62, 0.0 }
 0x222   : > { %1512 = vadd.xlane.f32.xlu1 %v1511_v36  ;;  %v1580_v36 = vadd.s32 4294967288, %v1575_v32 }
 0x224   : > { %1503 = vadd.xlane.f32.xlu0 %v1502_v45  ;;  %v3558_v42 = vsub.s32 %v1580_v36, %v3494_v35 }
 0x226   : > { %1506 = vadd.xlane.f32.xlu1 %v1505_v50 }
 0x228   : > { %1515 = vadd.xlane.f32.xlu0 %v1514_v53 }
 0x22a   : > { %1518 = vadd.xlane.f32.xlu1 %v1517_v56 }
 0x22c   : > { %1521 = vadd.xlane.f32.xlu0 %v1520_v59 }
 0x22e   : > { %1524 = vadd.xlane.f32.xlu1 %v1523_v61 }
 0x230   : > { %1527 = vadd.xlane.f32.xlu0 %v1526_v0 }
 0x232   : > { %1530 = vadd.xlane.f32.xlu1 %v1529_v48 }
 0x246   : > { %1539 = vperm.xlu0 %3013, %v2762_v17  }
 0x2a1   : > { %v1486_v18 = vpop.xlane.xlu0 %1485 }
 0x2a3   : > { %v1492_v19 = vpop.xlane.xlu1 %1491 }
 0x2a5   : > { %v1489_v20 = vpop.xlane.xlu0 %1488 }
 0x2a7   : > { %v1495_v21 = vpop.xlane.xlu1 %1494 }
 0x2a9   : > { %v1498_v22 = vpop.xlane.xlu0 %1497 }
 0x2ab   : > { %v1501_v23 = vpop.xlane.xlu1 %1500 }
 0x2ad   : > { %v1510_v24 = vpop.xlane.xlu0 %1509 }
 0x2af   : > { %v1513_v27 = vpop.xlane.xlu1 %1512 }
 0x2b1   : > { %v1504_v26 = vpop.xlane.xlu0 %1503 }
 0x2b3   : > { %v1507_v63 = vpop.xlane.xlu1 %1506 }
 0x2b5   : > { %v1516_v38 = vpop.xlane.xlu0 %1515 }
 0x2b7   : > { %v1519_v34 = vpop.xlane.xlu1 %1518 }
 0x2b9   : > { %v1522_v31 = vpop.xlane.xlu0 %1521 }
 0x2bb   : > { %v1525_v40 = vpop.xlane.xlu1 %1524 }
 0x2bd   : > { %v1528_v39 = vpop.xlane.xlu0 %1527 }
 0x2bf   : > { %v1531_v58 = vpop.xlane.xlu1 %1530 }
 0x2c5   : > { %v1540_v43 = vpop.permute.xlu0 %1539 }
 0x2c6   : > { %v3560_v45 = vadd.f32 %v1540_v43, %v1486_v18  ;;  %v3562_v46 = vadd.f32 %v1540_v43, %v1489_v20  ;;  %v3564_v47 = vadd.f32 %v1540_v43, %v1492_v19  ;;  %v3566_v49 = vadd.f32 %v1540_v43, %v1495_v21 }
 0x2c7   : > { %v3568_v33 = vadd.f32 %v1540_v43, %v1498_v22  ;;  %v3570_v50 = vadd.f32 %v1540_v43, %v1501_v23  ;;  %v3572_v51 = vadd.f32 %v1540_v43, %v1504_v26  ;;  %v3574_v52 = vadd.f32 %v1540_v43, %v1507_v63 }
 0x2c8   : > { %v3576_v37 = vadd.f32 %v1540_v43, %v1510_v24  ;;  %v3578_v53 = vadd.f32 %v1540_v43, %v1513_v27  ;;  %v3580_v54 = vadd.f32 %v1540_v43, %v1516_v38  ;;  %v3582_v55 = vadd.f32 %v1540_v43, %v1519_v34 }
 0x2c9   : > { %v3584_v56 = vadd.f32 %v1540_v43, %v1522_v31  ;;  %v3586_v57 = vadd.f32 %v1540_v43, %v1525_v40  ;;  %v1579_v59 = vrot.slane %v3560_v45, %v3555_v41  ;;  %v1584_v60 = vrot.slane %v3562_v46, %v3558_v42 }
 0x2ca   : > { %v1590_v61 = vrot.slane %v3564_v47, %v3555_v41  ;;  %v1594_v62 = vrot.slane %v3566_v49, %v3558_v42  ;;  %v3596_v0 = vadd.f32 %v1540_v43, %v1528_v39  ;;  %v3598_v48 = vadd.f32 %v1540_v43, %v1531_v58 }
 0x2cb   : > { %v1599_v17 = vrot.slane %v3568_v33, %v3555_v41  ;;  %v1603_v18 = vrot.slane %v3570_v50, %v3558_v42  ;;  %v1586_v19 = vsel %vm1585_vm11, %v1584_v60, %v1579_v59  ;;  %v1608_v21 = vrot.slane %v3572_v51, %v3555_v41 }
 0x2cc   : > { %v1595_v20 = vsel %vm1585_vm11, %v1594_v62, %v1590_v61  ;;  %v1612_v22 = vrot.slane %v3574_v52, %v3558_v42  ;;  %v1617_v24 = vrot.slane %v3576_v37, %v3555_v41  ;;  %v1621_v26 = vrot.slane %v3578_v53, %v3558_v42 }
 0x2cd   : > { %v1604_v23 = vsel %vm1585_vm11, %v1603_v18, %v1599_v17  ;;  %v1626_v27 = vrot.slane %v3580_v54, %v3555_v41  ;;  %v1630_v38 = vrot.slane %v3582_v55, %v3558_v42  ;;  %v1635_v63 = vrot.slane %v3584_v56, %v3555_v41 }
 0x2ce   : > { %v1639_v31 = vrot.slane %v3586_v57, %v3558_v42  ;;  %v1651_v32 = vsel %vm1650_vm12, %v1595_v20, %v1586_v19  ;;  %v1613_v34 = vsel %vm1585_vm11, %v1612_v22, %v1608_v21  ;;  %v1644_v36 = vrot.slane %v3596_v0, %v3555_v41 }
 0x2cf   : > { %v1648_v39 = vrot.slane %v3598_v48, %v3558_v42  ;;  %v1653_v40 = vsel %vm1652_vm13, %v1604_v23, %v1651_v32  ;;  %v1622_v43 = vsel %vm1585_vm11, %v1621_v26, %v1617_v24  ;;  %v1631_v59 = vsel %vm1585_vm11, %v1630_v38, %v1626_v27 }
 0x2d0   : > { %v1655_v58 = vsel %vm1654_vm14, %v1613_v34, %v1653_v40  ;;  %v1640_v61 = vsel %vm1585_vm11, %v1639_v31, %v1635_v63  ;;  %v4018_v21 = vsub.s32 3, %v3494_v35  ;;  %v1676_v23 = vsub.s32 1, %v3494_v35 }
 0x2d1   : > { %v1657_v60 = vsel %vm1656_vm15, %v1622_v43, %v1655_v58  ;;  %v1649_v17 = vsel %vm1585_vm11, %v1648_v39, %v1644_v36  ;;  %v1688_v27 = vsub.s32 4, %v3494_v35  ;;  %v4017_v34 = vsub.s32 5, %v3494_v35 }
 0x2d2   : > { %v1659_v62 = vsel %vm1658_vm0, %v1631_v59, %v1657_v60  ;;  %v4016_v58 = vsub.s32 6, %v3494_v35 }
 0x2d3   : > { %v1661_v18 = vsel %vm1660_vm1, %v1640_v61, %v1659_v62 }
 0x2d4   : > { %v1663_v19 = vsel %vm1662_vm2, %v1649_v17, %v1661_v18  ;;  %v1700_v17 = vsub.s32 7, %v3494_v35 }
 0x2d5   : > { %v1666_v20 = vsel %vm1665_vm3, %v1663_v19, -inf }
 0x2d6   : > { %1667 = vmax.xlane.f32.xlu1 %v1666_v20 }
 0x363   : > { %v1668_v22 = vpop.xlane.xlu1 %1667 }
 0x364   : > { %v1673_v24 = vrot.slane %v1668_v22, %v3501_v44  ;;  %v1685_v38 = vrot.slane %v1668_v22, %v4018_v21  ;;  %v1677_v63 = vrot.slane %v1668_v22, %v1676_v23  ;;  %v1689_v36 = vrot.slane %v1668_v22, %v1688_v27 }
 0x365   : > { %v1693_v59 = vrot.slane %v1668_v22, %v4017_v34 }
 0x366   : > { %v1710_v26 = vsub.f32 %v3560_v45, %v1673_v24  ;;  %v1711_v31 = vsub.f32 %v3562_v46, %v1673_v24  ;;  %v1717_v39 = vsub.f32 %v3574_v52, %v1685_v38  ;;  %v1680_v45 = vsub.s32 2, %v3494_v35 }
 0x367   : > { %v1712_v40 = vsub.f32 %v3564_v47, %v1677_v63  ;;  %v1719_v46 = vsub.f32 %v3578_v53, %v1689_v36  ;;  %v1713_v62 = vsub.f32 %v3566_v49, %v1677_v63  ;;  %v1697_v47 = vrot.slane %v1668_v22, %v4016_v58 }
 0x368   : > { %v1726_v32 = vmul.f32 1.442695, %v1710_v26  ;;  %v1728_v43 = vmul.f32 1.442695, %v1711_v31  ;;  %v1740_v60 = vmul.f32 1.442695, %v1717_v39  ;;  %v1681_v61 = vrot.slane %v1668_v22, %v1680_v45 }
 0x369   : > { %v1730_v52 = vmul.f32 1.442695, %v1712_v40  ;;  %v1721_v18 = vsub.f32 %v3582_v55, %v1693_v59  ;;  %v1744_v19 = vmul.f32 1.442695, %v1719_v46  ;;  %v1732_v53 = vmul.f32 1.442695, %v1713_v62 }
 0x36a   : > { %3015 = vpow2.f32 %v1726_v32  ;;  %v1714_v20 = vsub.f32 %v3568_v33, %v1681_v61  ;;  %v1701_v49 = vrot.slane %v1668_v22, %v1700_v17  ;;  %v1723_v26 = vsub.f32 %v3586_v57, %v1697_v47 }
 0x36b   : > { %3017 = vpow2.f32 %v1728_v43  ;;  %v1748_v63 = vmul.f32 1.442695, %v1721_v18  ;;  %v1715_v31 = vsub.f32 %v3570_v50, %v1681_v61  ;;  %v1716_v22 = vsub.f32 %v3572_v51, %v1685_v38 }
 0x36c   : > { %3019 = vpow2.f32 %v1740_v60  ;;  %v1734_v55 = vmul.f32 1.442695, %v1714_v20  ;;  %v1725_v33 = vsub.f32 %v3598_v48, %v1701_v49  ;;  %v1752_v39 = vmul.f32 1.442695, %v1723_v26 }
 0x36d   : > { %3021 = vpow2.f32 %v1730_v52  ;;  %v1736_v57 = vmul.f32 1.442695, %v1715_v31  ;;  %v1718_v48 = vsub.f32 %v3576_v37, %v1689_v36  ;;  %v1738_v46 = vmul.f32 1.442695, %v1716_v22  ;;  %v2139_v31 = vld [vmem:[%s3998_s15 + $0x8] sm:$0xff] }
 0x36e   : > { %3023 = vpow2.f32 %v1744_v19  ;;  %v1756_v50 = vmul.f32 1.442695, %v1725_v33  ;;  %v1720_v51 = vsub.f32 %v3580_v54, %v1693_v59  ;;  %v1722_v37 = vsub.f32 %v3584_v56, %v1697_v47 }
 0x36f   : > { %3025 = vpow2.f32 %v1732_v53  ;;  %v1742_v38 = vmul.f32 1.442695, %v1718_v48  ;;  %v1724_v54 = vsub.f32 %v3596_v0, %v1701_v49 }
 0x370   : > { %3027 = vpow2.f32 %v1748_v63  ;;  %v1746_v36 = vmul.f32 1.442695, %v1720_v51  ;;  %v1750_v59 = vmul.f32 1.442695, %v1722_v37  ;;  %v2138_v63 = vld [vmem:[%s3998_s15] sm:$0xff] }
 0x371   : > { %3029 = vpow2.f32 %v1734_v55  ;;  %v1754_v56 = vmul.f32 1.442695, %v1724_v54  ;;  %v2140_v55 = vld [vmem:[%s3998_s15 + $0x10] sm:$0xff]  ;;  %v2964_v33 = vpack.c.bf16 %v2139_v31, %v2138_v63 }
 0x372   : > { %3031 = vpow2.f32 %v1752_v39  ;;  %v2141_v39 = vld [vmem:[%s3998_s15 + $0x18] sm:$0xff] }
 0x373   : > { %3033 = vpow2.f32 %v1736_v57  ;;  %2965 = vmatpush3.bf16.msra.mxu1 %v2964_v33  ;;  %v2967_v22 = vpack.c.bf16 %v2141_v39, %v2140_v55 }
 0x374   : > { %v3668_v24 = vpop.eup %3015  ;;  %3035 = vpow2.f32 %v1756_v50  ;;  %2966 = vmatprep.subr.bf16.mxu1 %v4014_v25 }
 0x375   : > { %1775 = vperm.xlu1 %3014, %v3668_v24   ;;  %v3675_v32 = vpop.eup %3017  ;;  %3037 = vpow2.f32 %v1738_v46 }
 0x376   : > { %v3680_v40 = vpop.eup %3019  ;;  %3039 = vpow2.f32 %v1742_v38 }
 0x377   : > { %v3682_v43 = vpop.eup %3021  ;;  %1796 = vperm.xlu0 %3013, %v3680_v40   ;;  %3041 = vpow2.f32 %v1746_v36  ;;  %2968 = vmatpush3.bf16.msra.mxu1 %v2967_v22 }
 0x378   : > { %v3687_v60 = vpop.eup %3023  ;;  %3043 = vpow2.f32 %v1750_v59  ;;  %2981 = vmatprep.subr.bf16.mxu1 %v4014_v25 }
 0x379   : > { %1778 = vperm.xlu1 %3014, %v3675_v32   ;;  %v3689_v61 = vpop.eup %3025  ;;  %3045 = vpow2.f32 %v1754_v56 }
 0x37a   : > { %v3694_v62 = vpop.eup %3027  ;;  %2902 = vmatmul.mubr.msk.f32.vlgmr.msra.gmra.mrb[0].mxu1 %vm1249_vm10, %v3484_v29 }
 0x37b   : > { %1802 = vperm.xlu0 %3013, %v3687_v60   ;;  %v3696_v52 = vpop.eup %3029  ;;  %2934 = vmatprep.mubr.msk.f32.mxu1 %vm3088_vm9, %v4013_v28 }
 0x37c   : > { %v3701_v18 = vpop.eup %3031 }
 0x37d   : > { %1781 = vperm.xlu1 %3014, %v3682_v43   ;;  %v3703_v19 = vpop.eup %3033 }
 0x37e   : > { %v3708_v20 = vpop.eup %3035 }
 0x37f   : > { %1808 = vperm.xlu0 %3013, %v3694_v62   ;;  %v3710_v53 = vpop.eup %3037 }
 0x380   : > { %v3714_v47 = vpop.eup %3039 }
 0x381   : > { %1784 = vperm.xlu1 %3014, %v3689_v61   ;;  %v3717_v26 = vpop.eup %3041 }
 0x382   : > { %v3720_v0 = vpop.eup %3043 }
 0x383   : > { %1814 = vperm.xlu0 %3013, %v3701_v18   ;;  %v3723_v49 = vpop.eup %3045 }
 0x385   : > { %1787 = vperm.xlu1 %3014, %v3696_v52  }
 0x387   : > { %1820 = vperm.xlu0 %3013, %v3708_v20  }
 0x389   : > { %1790 = vperm.xlu1 %3014, %v3703_v19  }
 0x38d   : > { %1793 = vperm.xlu1 %3014, %v3710_v53  }
 0x391   : > { %1799 = vperm.xlu1 %3014, %v3714_v47  }
 0x395   : > { %1805 = vperm.xlu1 %3014, %v3717_v26  }
 0x399   : > { %1811 = vperm.xlu1 %3014, %v3720_v0  }
 0x39d   : > { %1817 = vperm.xlu1 %3014, %v3723_v49  }
 0x3f4   : > { %v1776_v57 = vpop.permute.xlu1 %1775 }
 0x3f5   : > { %v1825_v58 = vrot.slane %v1776_v57, %v3555_v41 }
 0x3f6   : > { %v1797_v51 = vpop.permute.xlu0 %1796 }
 0x3f7   : > { %v1856_v25 = vrot.slane %v1797_v51, %v3558_v42 }
 0x3f8   : > { %v1779_v50 = vpop.permute.xlu1 %1778 }
 0x3f9   : > { %v1829_v33 = vrot.slane %v1779_v50, %v3558_v42 }
 0x3fa   : > { %v1803_v37 = vpop.permute.xlu0 %1802 }
 0x3fc   : > { %v1782_v48 = vpop.permute.xlu1 %1781 }
 0x3fd   : > { %v1834_v39 = vrot.slane %v1782_v48, %v3555_v41  ;;  %v1830_v48 = vsel %vm1585_vm11, %v1829_v33, %v1825_v58 }
 0x3fe   : > { %v1809_v59 = vpop.permute.xlu0 %1808 }
 0x400   : > { %v1785_v46 = vpop.permute.xlu1 %1784 }
 0x401   : > { %v1838_v63 = vrot.slane %v1785_v46, %v3558_v42 }
 0x402   : > { %v1815_v31 = vpop.permute.xlu0 %1814 }
 0x403   : > { %v1839_v46 = vsel %vm1585_vm11, %v1838_v63, %v1834_v39  ;;  %v1883_v51 = vrot.slane %v1815_v31, %v3558_v42 }
 0x404   : > { %v1788_v38 = vpop.permute.xlu1 %1787  ;;  %v1894_v57 = vsel %vm1650_vm12, %v1839_v46, %v1830_v48 }
 0x405   : > { %v1843_v30 = vrot.slane %v1788_v38, %v3555_v41 }
 0x406   : > { %v1821_v63 = vpop.permute.xlu0 %1820 }
 0x408   : > { %v1791_v36 = vpop.permute.xlu1 %1790 }
 0x409   : > { %v1847_v55 = vrot.slane %v1791_v36, %v3558_v42  ;;  %v1865_v36 = vrot.slane %v1803_v37, %v3558_v42 }
 0x40b   : > { %v1848_v50 = vsel %vm1585_vm11, %v1847_v55, %v1843_v30 }
 0x40c   : > { %v1794_v54 = vpop.permute.xlu1 %1793  ;;  %v1895_v37 = vsel %vm1652_vm13, %v1848_v50, %v1894_v57 }
 0x40d   : > { %v1852_v22 = vrot.slane %v1794_v54, %v3555_v41  ;;  %v1874_v54 = vrot.slane %v1809_v59, %v3558_v42 }
 0x40f   : > { %v1857_v38 = vsel %vm1585_vm11, %v1856_v25, %v1852_v22  ;;  %v1892_v25 = vrot.slane %v1821_v63, %v3558_v42 }
 0x410   : > { %v1800_v56 = vpop.permute.xlu1 %1799  ;;  %v1896_v55 = vsel %vm1654_vm14, %v1857_v38, %v1895_v37 }
 0x411   : > { %v1861_v28 = vrot.slane %v1800_v56, %v3555_v41 }
 0x414   : > { %v1806_v29 = vpop.permute.xlu1 %1805 }
 0x415   : > { %v1870_v34 = vrot.slane %v1806_v29, %v3555_v41  ;;  %v1866_v29 = vsel %vm1585_vm11, %v1865_v36, %v1861_v28 }
 0x417   : > { %v1875_v30 = vsel %vm1585_vm11, %v1874_v54, %v1870_v34 }
 0x418   : > { %v1812_v21 = vpop.permute.xlu1 %1811 }
 0x419   : > { %v1879_v56 = vrot.slane %v1812_v21, %v3555_v41  ;;  %v1897_v21 = vsel %vm1656_vm15, %v1866_v29, %v1896_v55 }
 0x41a   : > { %v1898_v33 = vsel %vm1658_vm0, %v1875_v30, %v1897_v21 }
 0x41b   : > { %v1884_v58 = vsel %vm1585_vm11, %v1883_v51, %v1879_v56 }
 0x41c   : > { %v1818_v59 = vpop.permute.xlu1 %1817  ;;  %v1899_v28 = vsel %vm1660_vm1, %v1884_v58, %v1898_v33 }
 0x41d   : > { %v1888_v31 = vrot.slane %v1818_v59, %v3555_v41 }
 0x41f   : > { %v1893_v39 = vsel %vm1585_vm11, %v1892_v25, %v1888_v31 }
 0x420   : > { %v1900_v22 = vsel %vm1662_vm2, %v1893_v39, %v1899_v28 }
 0x421   : > { %v1902_v34 = vsel %vm1665_vm3, %v1900_v22, 0.0  ;;  %v4042_v22 = vmov 0.0|0.0  }
 0x422   : > { %1903 = vadd.xlane.f32.xlu1 %v1902_v34  ;;  %v1237_v34 = vld [vmem:[#allocation3] sm:$0xff] }
 0x44d   : > { %v2215_v39 = vpop.f32.mrb[0].mxu1 }
 0x4af   : > { %v1904_v46 = vpop.xlane.xlu1 %1903 }
 0x4b0   : > { %v1925_v36 = vrot.slane %v1904_v46, %v1688_v27  ;;  %v1909_v50 = vrot.slane %v1904_v46, %v3501_v44  ;;  %v1937_v48 = vrot.slane %v1904_v46, %v1700_v17  ;;  %v1913_v54 = vrot.slane %v1904_v46, %v1676_v23 }
 0x4b1   : > { %v1917_v57 = vrot.slane %v1904_v46, %v1680_v45  ;;  %v4038_v23 = vsub.s32 3, %v3494_v35 }
 0x4b2   : > { %3047 = vrcp.f32 %v1925_v36 }
 0x4b3   : > { %3049 = vrcp.f32 %v1909_v50  ;;  %v1921_v37 = vrot.slane %v1904_v46, %v4038_v23 }
 0x4b4   : > { %3051 = vrcp.f32 %v1937_v48 }
 0x4b5   : > { %3053 = vrcp.f32 %v1913_v54 }
 0x4b6   : > { %3055 = vrcp.f32 %v1917_v57 }
 0x4b7   : > { %3057 = vrcp.f32 %v1921_v37 }
 0x4bc   : > { %v3048_v38 = vpop.eup %3047 }
 0x4bd   : > { %v3050_v56 = vpop.eup %3049  ;;  %v1960_v51 = vmul.f32 %v3048_v38, %v3687_v60 }
 0x4be   : > { %v3052_v27 = vpop.eup %3051  ;;  %v1947_v44 = vmul.f32 %v3050_v56, %v3668_v24  ;;  %v1948_v63 = vmul.f32 %v3050_v56, %v3675_v32 }
 0x4bf   : > { %2017 = vperm.xlu1 %3014, %v1960_v51   ;;  %v1968_v17 = vmul.f32 %v3052_v27, %v3723_v49  ;;  %v3054_v29 = vpop.eup %3053  ;;  %v4039_v49 = vsub.s32 5, %v3494_v35 }
 0x4c0   : > { %1972 = vperm.xlu0 %3013, %v1947_v44   ;;  %v1950_v60 = vmul.f32 %v3054_v29, %v3682_v43  ;;  %v1951_v45 = vmul.f32 %v3054_v29, %v3689_v61  ;;  %v3056_v24 = vpop.eup %3055  ;;  %v4040_v43 = vsub.s32 6, %v3494_v35 }
 0x4c1   : > { %v1953_v30 = vmul.f32 %v3056_v24, %v3696_v52  ;;  %v1929_v32 = vrot.slane %v1904_v46, %v4039_v49  ;;  %v1954_v55 = vmul.f32 %v3056_v24, %v3703_v19  ;;  %v3058_v58 = vpop.eup %3057  ;;  %v1959_v52 = vmul.f32 %v3048_v38, %v3714_v47  ;;  %v2903_v47 = vpop.f32.mrb[1].mxu1  ;;  %v2763_v24 = vld [vmem:[%s4043_s3] ss:$0 sm:$0xff]  ;;  %s4050_s3 = smov %s4049_s29 }
 0x4c2   : > { %v1956_v59 = vmul.f32 %v3058_v58, %v3710_v53  ;;  %v1933_v25 = vrot.slane %v1904_v46, %v4040_v43  ;;  %v1957_v61 = vmul.f32 %v3058_v58, %v3680_v40  ;;  %v1969_v40 = vmul.f32 %v3052_v27, %v3708_v20 }
 0x4c3   : > { %2042 = vperm.xlu1 %3014, %v1968_v17   ;;  %3059 = vrcp.f32 %v1929_v32  ;;  %v2216_v43 = vadd.f32 %v2763_v24, %v2215_v39 }
 0x4c4   : > { %1977 = vperm.xlu0 %3013, %v1948_v63   ;;  %3061 = vrcp.f32 %v1933_v25 }
 0x4c5   : > { %v2765_v39 = vmul.f32 -1.442695, %v2216_v43 }
 0x4c7   : > { %3063 = vpow2.f32 %v2765_v39 }
 0x4c8   : > { %1982 = vperm.xlu0 %3013, %v1950_v60  }
 0x4cc   : > { %1987 = vperm.xlu0 %3013, %v1951_v45  }
 0x4cd   : > { %v3060_v21 = vpop.eup %3059 }
 0x4ce   : > { %v1962_v31 = vmul.f32 %v3060_v21, %v3717_v26  ;;  %v1963_v19 = vmul.f32 %v3060_v21, %v3694_v62  ;;  %v3062_v33 = vpop.eup %3061  ;;  %v2243_v26 = vld [vmem:[%s4041_s4] sm:$0xff]  ;;  %v2244_v62 = vld [vmem:[%s4041_s4 + $0x8] sm:$0xff] }
 0x4cf   : > { %v1965_v53 = vmul.f32 %v3062_v33, %v3720_v0  ;;  %v1966_v35 = vmul.f32 %v3062_v33, %v3701_v18  ;;  %v2245_v0 = vld [vmem:[%s4041_s4 + $0x10] sm:$0xff]  ;;  %v2970_v28 = vpack.c.bf16 %v2244_v62, %v2243_v26  ;;  %v2246_v18 = vld [vmem:[%s4041_s4 + $0x18] sm:$0xff] }
 0x4d0   : > { %1992 = vperm.xlu0 %3013, %v1953_v30   ;;  %v2973_v20 = vpack.c.bf16 %v2246_v18, %v2245_v0 }
 0x4d1   : > { %2971 = vmatpush3.bf16.msra.mxu0 %v2970_v28 }
 0x4d2   : > { %2972 = vmatprep.subr.bf16.mxu0 %v4042_v22 }
 0x4d4   : > { %1997 = vperm.xlu0 %3013, %v1954_v55  }
 0x4d5   : > { %2974 = vmatpush3.bf16.msra.mxu0 %v2973_v20 }
 0x4d6   : > { %2975 = vmatprep.subr.bf16.mxu0 %v4042_v22 }
 0x4d8   : > { %2002 = vperm.xlu0 %3013, %v1956_v59  }
 0x4dc   : > { %2007 = vperm.xlu0 %3013, %v1957_v61  }
 0x4e0   : > { %2012 = vperm.xlu0 %3013, %v1959_v52  }
 0x4e4   : > { %2022 = vperm.xlu0 %3013, %v1962_v31  }
 0x4e8   : > { %2027 = vperm.xlu0 %3013, %v1963_v19  }
 0x4ec   : > { %2032 = vperm.xlu0 %3013, %v1965_v53  }
 0x4f0   : > { %2037 = vperm.xlu0 %3013, %v1966_v35  }
 0x4f4   : > { %2047 = vperm.xlu0 %3013, %v1969_v40  }
 0x4f8   : > { %2404 = vrot.lane.b32.xlu0 %v1237_v34, %s3092_s26 }
 0x53e   : > { %v2018_v49 = vpop.permute.xlu1 %2017 }
 0x53f   : > { %v1973_v46 = vpop.permute.xlu0 %1972  ;;  %v2580_v31 = vrot.slane %v2018_v49, %v3558_v42 }
 0x540   : > { %v2540_v50 = vrot.slane %v1973_v46, %v3555_v41  ;;  %v2050_v19 = vmul.f32 %v1973_v46, %v3227_v1 }
 0x543   : > { %v1978_v36 = vpop.permute.xlu0 %1977 }
 0x544   : > { %v2544_v48 = vrot.slane %v1978_v36, %v3558_v42  ;;  %v2051_v25 = vmul.f32 %v1978_v36, %v3232_v2 }
 0x546   : > { %v2545_v54 = vsel %vm1585_vm11, %v2544_v48, %v2540_v50  ;;  %v2067_v1 = vsel %vm1249_vm10, %v2051_v25, 0.0 }
 0x547   : > { %v1983_v38 = vpop.permute.xlu0 %1982 }
 0x548   : > { %v2549_v51 = vrot.slane %v1983_v38, %v3555_v41  ;;  %v2052_v61 = vmul.f32 %v1983_v38, %v3237_v3 }
 0x54b   : > { %v1988_v56 = vpop.permute.xlu0 %1987 }
 0x54c   : > { %v2553_v57 = vrot.slane %v1988_v56, %v3558_v42  ;;  %v2053_v32 = vmul.f32 %v1988_v56, %v3242_v4 }
 0x54e   : > { %v2554_v27 = vsel %vm1585_vm11, %v2553_v57, %v2549_v51 }
 0x54f   : > { %v2609_v44 = vsel %vm1650_vm12, %v2554_v27, %v2545_v54  ;;  %v1993_v17 = vpop.permute.xlu0 %1992 }
 0x550   : > { %v2558_v29 = vrot.slane %v1993_v17, %v3555_v41  ;;  %v2054_v4 = vmul.f32 %v1993_v17, %v3247_v5  ;;  %v2075_v5 = vsel %vm1249_vm10, %v2052_v61, 0.0 }
 0x553   : > { %v1998_v63 = vpop.permute.xlu0 %1997 }
 0x554   : > { %v2562_v23 = vrot.slane %v1998_v63, %v3558_v42  ;;  %v2055_v59 = vmul.f32 %v1998_v63, %v3252_v6  ;;  %v2076_v6 = vsel %vm1249_vm10, %v2053_v32, 0.0 }
 0x555   : > { %v2077_v62 = vadd.f32 %v2076_v6, %v2075_v5 }
 0x556   : > { %v2563_v37 = vsel %vm1585_vm11, %v2562_v23, %v2558_v29  ;;  %v2085_v40 = vsel %vm1249_vm10, %v2055_v59, 0.0 }
 0x557   : > { %v2610_v60 = vsel %vm1652_vm13, %v2563_v37, %v2609_v44  ;;  %v2003_v45 = vpop.permute.xlu0 %2002  ;;  %v2078_v54 = vrot.slane %v2077_v62, 4 }
 0x558   : > { %v2567_v55 = vrot.slane %v2003_v45, %v3555_v41  ;;  %v2056_v35 = vmul.f32 %v2003_v45, %v3258_v7  ;;  %v2084_v7 = vsel %vm1249_vm10, %v2054_v4, 0.0  ;;  %v3064_v4 = vpop.eup %3063 }
 0x559   : > { %v2086_v18 = vadd.f32 %v2085_v40, %v2084_v7 }
 0x55a   : > { %v2093_v20 = vsel %vm1249_vm10, %v2056_v35, 0.0 }
 0x55b   : > { %v2008_v30 = vpop.permute.xlu0 %2007  ;;  %v2087_v56 = vrot.slane %v2086_v18, 4 }
 0x55c   : > { %v2571_v58 = vrot.slane %v2008_v30, %v3558_v42  ;;  %v2057_v52 = vmul.f32 %v2008_v30, %v3263_v8  ;;  %v2059_v8 = vmul.f32 %v2018_v49, %v3273_v10  ;;  %v2066_v10 = vsel %vm1249_vm10, %v2050_v19, 0.0 }
 0x55d   : > { %v2068_v46 = vadd.f32 %v2067_v1, %v2066_v10  ;;  %v2088_v30 = vadd.f32 %v2087_v56, %v2086_v18 }
 0x55e   : > { %v2572_v21 = vsel %vm1585_vm11, %v2571_v58, %v2567_v55  ;;  %v2094_v47 = vsel %vm1249_vm10, %v2057_v52, 0.0  ;;  %v2103_v34 = vsel %vm1249_vm10, %v2059_v8, 0.0  ;;  %v3872_v55 = vpop.permute.xlu1 %2042 }
 0x55f   : > { %v2611_v33 = vsel %vm1654_vm14, %v2572_v21, %v2610_v60  ;;  %v2013_v53 = vpop.permute.xlu0 %2012  ;;  %v2095_v36 = vadd.f32 %v2094_v47, %v2093_v20  ;;  %v2069_v44 = vrot.slane %v2068_v46, 4  ;;  %v2089_v52 = vrot.slane %v2088_v30, 2 }
 0x560   : > { %v2058_v2 = vmul.f32 %v2013_v53, %v3268_v9  ;;  %v2576_v3 = vrot.slane %v2013_v53, %v3555_v41  ;;  %v2222_v47 = vadd.f32 1.0, %v3064_v4  ;;  %v2324_v4 = vld [vmem:[%s4044_s1 + $0x18] sm:$0xff] }
 0x561   : > { %v2096_v17 = vrot.slane %v2095_v36, 4  ;;  %v2070_v49 = vadd.f32 %v2069_v44, %v2068_v46  ;;  %v2090_v5 = vadd.f32 %v2089_v52, %v2088_v30 }
 0x562   : > { %v2581_v26 = vsel %vm1585_vm11, %v2580_v31, %v2576_v3  ;;  %v2102_v9 = vsel %vm1249_vm10, %v2058_v2, 0.0  ;;  %3065 = vrcp.f32 %v2222_v47 }
 0x563   : > { %v2612_v0 = vsel %vm1656_vm15, %v2581_v26, %v2611_v33  ;;  %v2023_v28 = vpop.permute.xlu0 %2022  ;;  %v2104_v50 = vadd.f32 %v2103_v34, %v2102_v9  ;;  %v2097_v32 = vadd.f32 %v2096_v17, %v2095_v36  ;;  %v2064_v33 = vmul.f32 %v3872_v55, %v3300_v15 }
 0x564   : > { %v2060_v48 = vmul.f32 %v2023_v28, %v3278_v11  ;;  %v2585_v51 = vrot.slane %v2023_v28, %v3555_v41  ;;  %v2079_v11 = vadd.f32 %v2078_v54, %v2077_v62  ;;  %v2071_v53 = vrot.slane %v2070_v49, 2 }
 0x565   : > { %v2105_v63 = vrot.slane %v2104_v50, 4  ;;  %v2098_v6 = vrot.slane %v2097_v32, 2  ;;  %v2129_v9 = vsel %vm1249_vm10, %v2064_v33, 0.0  ;;  %v2091_v46 = vrot.slane %v2090_v5, 1 }
 0x566   : > { %v2111_v29 = vsel %vm1249_vm10, %v2060_v48, 0.0  ;;  %v2080_v43 = vrot.slane %v2079_v11, 2  ;;  %v2072_v26 = vadd.f32 %v2071_v53, %v2070_v49  ;;  %v4045_v53 = vmov 0.0  }
 0x567   : > { %v2028_v38 = vpop.permute.xlu0 %2027  ;;  %v2106_v58 = vadd.f32 %v2105_v63, %v2104_v50  ;;  %v2099_v62 = vadd.f32 %v2098_v6, %v2097_v32  ;;  %v3075_v6 = vld [vmem:[#allocation2] sm:$0xff] }
 0x568   : > { %v2061_v57 = vmul.f32 %v2028_v38, %v3283_v12  ;;  %v2589_v27 = vrot.slane %v2028_v38, %v3558_v42  ;;  %v2081_v8 = vadd.f32 %v2080_v43, %v2079_v11  ;;  %v2073_v36 = vrot.slane %v2072_v26, 1 }
 0x569   : > { %v2107_v35 = vrot.slane %v2106_v58, 2  ;;  %v2100_v50 = vrot.slane %v2099_v62, 1 }
 0x56a   : > { %v2112_v23 = vsel %vm1249_vm10, %v2061_v57, 0.0  ;;  %v2590_v37 = vsel %vm1585_vm11, %v2589_v27, %v2585_v51  ;;  %v2082_v10 = vrot.slane %v2081_v8, 1  ;;  %v2092_v27 = vadd.f32 %v2091_v46, %v2090_v5  ;;  %v2424_v46 = vld [vmem:[%s4049_s29] sm:$0xff]  ;;  %s4052_s29 = sld [smem:[#allocation18_spill]] }
 0x56b   : > { %v2113_v60 = vadd.f32 %v2112_v23, %v2111_v29  ;;  %v2613_v45 = vsel %vm1658_vm0, %v2590_v37, %v2612_v0  ;;  %v2033_v24 = vpop.permute.xlu0 %2032  ;;  %v2108_v0 = vadd.f32 %v2107_v35, %v2106_v58  ;;  %v2074_v44 = vadd.f32 %v2073_v36, %v2072_v26  ;;  %v2321_v58 = vld [vmem:[%s4044_s1] sm:$0xff]  ;;  %v2425_v36 = vld [vmem:[%s4050_s3 + $0x8] sm:$0xff] }
 0x56c   : > { %v2062_v59 = vmul.f32 %v2033_v24, %v3290_v13  ;;  %v2594_v21 = vrot.slane %v2033_v24, %v3555_v41  ;;  %v2101_v17 = vadd.f32 %v2100_v50, %v2099_v62  ;;  %v3066_v32 = vpop.eup %3065  ;;  %v2242_v35 = vld [vmem:[%s709_s2] sm:$0xff]  ;;  %v2426_v50 = vld [vmem:[%s4050_s3 + $0x10] sm:$0xff] }
 0x56d   : > { %v2114_v12 = vrot.slane %v2113_v60, 4  ;;  %v2109_v38 = vrot.slane %v2108_v0, 1 }
 0x56e   : > { %v2120_v2 = vsel %vm1249_vm10, %v2062_v59, 0.0  ;;  %v2322_v59 = vld [vmem:[%s4044_s1 + $0x8] sm:$0xff] }
 0x56f   : > { %v2115_v25 = vadd.f32 %v2114_v12, %v2113_v60  ;;  %v2038_v61 = vpop.permute.xlu0 %2037  ;;  %v2110_v23 = vadd.f32 %v2109_v38, %v2108_v0 }
 0x570   : > { %v2063_v31 = vmul.f32 %v2038_v61, %v3295_v14  ;;  %v2598_v19 = vrot.slane %v2038_v61, %v3558_v42 }
 0x571   : > { %v2116_v40 = vrot.slane %v2115_v25, 2 }
 0x572   : > { %v2121_v13 = vsel %vm1249_vm10, %v2063_v31, 0.0  ;;  %v2599_v3 = vsel %vm1585_vm11, %v2598_v19, %v2594_v21  ;;  %v2976_v21 = vpack.c.bf16 %v2322_v59, %v2321_v58  ;;  %v2323_v19 = vld [vmem:[%s4044_s1 + $0x10] sm:$0xff] }
 0x573   : > { %v2122_v39 = vadd.f32 %v2121_v13, %v2120_v2  ;;  %v3884_v14 = vsel %vm1660_vm1, %v2599_v3, %v2613_v45  ;;  %v3886_v1 = vpop.permute.xlu0 %2047  ;;  %v2117_v18 = vadd.f32 %v2116_v40, %v2115_v25  ;;  %v2979_v33 = vpack.c.bf16 %v2324_v4, %v2323_v19 }
 0x574   : > { %v2065_v15 = vmul.f32 %v3886_v1, %v3313_v16  ;;  %v2083_v16 = vadd.f32 %v2082_v10, %v2081_v8  ;;  %v2511_v10 = vstv %s3219_s30  ;;  %s4054_s30 = scalar_lea.vmem %s4053_s17, %s3285_s14 }
 0x575   : > { %v2123_v7 = vrot.slane %v2122_v39, 4  ;;  %v2118_v56 = vrot.slane %v2117_v18, 1 }
 0x576   : > { %v2130_v28 = vsel %vm1249_vm10, %v2065_v15, 0.0  ;;  %v2233_v37 = vsel %vm1650_vm12, %v2083_v16, %v2074_v44 }
 0x577   : > { %v2124_v20 = vadd.f32 %v2123_v7, %v2122_v39  ;;  %v2131_v34 = vadd.f32 %v2130_v28, %v2129_v9  ;;  %v2119_v11 = vadd.f32 %v2118_v56, %v2117_v18  ;;  %v2234_v45 = vsel %vm1652_vm13, %v2092_v27, %v2233_v37  ;;  %v2405_v62 = vpop.permute.xlu0 %2404  ;;  %v2510_v28 = vld [vmem:[%s4047_s6] sm:$0xff] }
 0x578   : > { %v2235_v30 = vsel %vm1654_vm14, %v2101_v17, %v2234_v45  ;;  %vm2512_vm4 = vcmp.gt.s32.totalorder %v2510_v28, %v2511_v10 }
 0x579   : > { %v2125_v48 = vrot.slane %v2124_v20, 2  ;;  %v2132_v54 = vrot.slane %v2131_v34, 4  ;;  %v2236_v12 = vsel %vm1656_vm15, %v2110_v23, %v2235_v30  ;;  %v2769_v23 = vld [vmem:[%s4052_s29] ss:$0 sm:$0xff] }
 0x57a   : > { %v2237_v43 = vsel %vm1658_vm0, %v2119_v11, %v2236_v12  ;;  %v2533_v11 = vld [vmem:[%s4054_s30] sm:$0xff] }
 0x57b   : > { %v2126_v51 = vadd.f32 %v2125_v48, %v2124_v20  ;;  %v2133_v57 = vadd.f32 %v2132_v54, %v2131_v34  ;;  %v4048_v20 = vmov 0   ;;  %v2982_v48 = vpack.c.bf16 %v2425_v36, %v2424_v46  ;;  %v2427_v54 = vld [vmem:[%s4050_s3 + $0x18] sm:$0xff] }
 0x57c   : > { %v2513_v34 = vsel %vm2512_vm4, 1, %v4048_v20  ;;  %v2985_v38 = vpack.c.bf16 %v2427_v54, %v2426_v50 }
 0x57d   : > { %v2127_v63 = vrot.slane %v2126_v51, 1  ;;  %v2134_v29 = vrot.slane %v2133_v57, 2  ;;  %2983 = vmatpush3.bf16.msra.mxu1 %v2982_v48 }
 0x57e   : > { %2984 = vmatprep.subr.bf16.mxu1 %v4042_v22 }
 0x57f   : > { %v2135_v60 = vadd.f32 %v2134_v29, %v2133_v57  ;;  %v2128_v24 = vadd.f32 %v2127_v63, %v2126_v51  ;;  %v2607_v51 = vrot.slane %v3886_v1, %v3558_v42  ;;  %v2603_v57 = vrot.slane %v3872_v55, %v3555_v41 }
 0x581   : > { %v2136_v49 = vrot.slane %v2135_v60, 1  ;;  %v2238_v61 = vsel %vm1660_vm1, %v2128_v24, %v2237_v43  ;;  %2986 = vmatpush3.bf16.msra.mxu1 %v2985_v38  ;;  %v2608_v27 = vsel %vm1585_vm11, %v2607_v51, %v2603_v57 }
 0x582   : > { %v2615_v17 = vsel %vm1662_vm2, %v2608_v27, %v3884_v14 }
 0x583   : > { %v2137_v25 = vadd.f32 %v2136_v49, %v2135_v60 }
 0x585   : > { %v2239_v52 = vsel %vm1662_vm2, %v2137_v25, %v2238_v61 }
 0x586   : > { %v2241_v31 = vmul.f32 %v3066_v32, %v2239_v52 }
 0x588   : > { %2913 = vmatmul.mubr.msk.f32.vlgmr.msra.gmra.mrb[2].mxu0 %vm1249_vm10, %v2241_v31 }
 0x589   : > { %2977 = vmatpush3.bf16.msra.mxu0 %v2976_v21  ;;  %2923 = vmatprep.mubr.msk.f32.mxu0 %vm3088_vm9, %v4045_v53 }
 0x58a   : > { %2978 = vmatprep.subr.bf16.mxu0 %v4042_v22  ;;  %v2536_v22 = vld [vmem:[%s717_s18] sm:$0xff] }
 0x58d   : > { %2980 = vmatpush3.bf16.msra.mxu0 %v2979_v33 }
 0x590   : > { %2924 = vmatmul.mubr.msk.f32.vlgmr.msra.gmra.mrb[2].mxu0 %vm1249_vm10, %v3075_v6 }
 0x663   : > { %v2391_v2 = vpop.f32.mrb[2].mxu0 }
 0x664   : > { %v2991_v13 = vadd.f32 %v2391_v2, %v2242_v35  ;;  %v2925_v3 = vpop.f32.mrb[3].mxu0 }
 0x666   : > { %3067 = vtanh.f32 %v2991_v13  ;;  %v2768_v40 = vmul.f32 -1.442695, %v2991_v13 }
 0x668   : > { %3069 = vpow2.f32 %v2768_v40 }
 0x670   : > { %v3068_v8 = vpop.eup %3067 }
 0x671   : > { %2409 = vrot.lane.b32.xlu1 %v3068_v8, %s3093_s5 }
 0x672   : > { %v3070_v39 = vpop.eup %3069 }
 0x673   : > { %v2399_v5 = vadd.f32 1.0, %v3070_v39 }
 0x675   : > { %3071 = vrcp.f32 %v2399_v5 }
 0x67f   : > { %v3072_v47 = vpop.eup %3071 }
 0x680   : > { %v2407_v7 = vmul.f32 %v3072_v47, %v2405_v62 }
 0x6e3   : > { %v2410_v15 = vpop.permute.xlu1 %2409 }
 0x6e4   : > { %v2412_v26 = vmul.f32 %v3072_v47, %v2410_v15 }
 0x6e6   : > { %2414 = vrot.lane.b32.xlu1 %v2412_v26, %s3092_s26 }
 0x758   : > { %v2415_v9 = vpop.permute.xlu1 %2414 }
 0x759   : > { %v2417_v0 = vadd.f32 %v2415_v9, %v2407_v7 }
 0x75b   : > { %3073 = vtanh.f32 %v2417_v0 }
 0x765   : > { %v3074_v18 = vpop.eup %3073 }
 0x766   : > { %2420 = vrot.lane.b32.xlu0 %v3074_v18, %s3093_s5  ;;  %s3094_s5 = smov 96  }
 0x76a   : > { %2515 = vperm.xlu0 %3013, %v2513_v34  }
 0x7d8   : > { %v2421_v16 = vpop.permute.xlu0 %2420 }
 0x7d9   : > { %v2423_v56 = vmul.f32 %v3072_v47, %v2421_v16 }
 0x7db   : > { %2436 = vrot.lane.b32.xlu1 %v2423_v56, %s3092_s26 }
 0x7df   : > { %2518 = vrot.lane.b32.xlu1 %v3075_v6, %s3094_s5 }
 0x7e9   : > { %v2516_v44 = vpop.permute.xlu0 %2515 }
 0x7ea   : > { %vm2517_vm5 = vcmp.eq.s32.totalorder %v2516_v44, 1 }
 0x7eb   : > { %v2617_v63 = vsel %vm2517_vm5, %v2615_v17, %v2536_v22  ;;  %v2527_v42 = vsel %vm2517_vm5, %v2417_v0, %v2405_v62 }
 0x7ec   : > { %2618 = vst.msk [vmem:[%s725_s25] sm:$0xff] %vm1665_vm3, %v2617_v63  ;;  %2529 = vrot.lane.b32.xlu1 %v2527_v42, %s3094_s5  ;;  %s4055_s5 = scalar_lea.vmem %s4004_s21, %s3285_s14 }
 0x84d   : > { %v2437_v41 = vpop.permute.xlu1 %2436 }
 0x84e   : > { %2935 = vmatmul.mubr.msk.f32.vlgmr.msra.gmra.mrb[2].mxu1 %vm1249_vm10, %v2437_v41 }
 0x851   : > { %v2519_v55 = vpop.permute.xlu1 %2518 }
 0x852   : > { %v2521_v14 = vsel %vm2517_vm5, %v2423_v56, %v2519_v55 }
 0x853   : > { %2523 = vrot.lane.b32.xlu0 %v2521_v14, %s3092_s26 }
 0x85e   : > { %v2530_v1 = vpop.permute.xlu1 %2529 }
 0x85f   : > { %2532 = vst.msk [vmem:[#allocation3] sm:$0xff] %vm1249_vm10, %v2530_v1 }
 0x8c5   : > { %v2524_v29 = vpop.permute.xlu0 %2523 }
 0x8c6   : > { %2526 = vst.msk [vmem:[#allocation2] sm:$0xff] %vm1249_vm10, %v2524_v29 }
 0x921   : > { %v2506_v37 = vpop.f32.mrb[2].mxu1 }
 0x922   : > { %v2507_v60 = vadd.f32 %v2769_v23, %v2506_v37  ;;  %v2936_v45 = vpop.f32.mrb[3].mxu1 }
 0x924   : > { %v2534_v24 = vsel %vm2517_vm5, %v2507_v60, %v2533_v11 }
 0x925   : > { %2535 = vst [vmem:[%s4055_s5] sm:$0xff] %v2534_v24 }
 0x926 PF: > { %s4056_s16 = sld [smem:[#allocation6_spill]] }
 0x92c   : > { %s35_s29 = sadd.s32 1, %s4056_s16  }
 0x92d   : > { %p32_p5 = scmp.ge.s32.totalorder %s35_s29, 9  }
 0x92f   :  { %34 = sbr.rel (!%p32_p5) target bundleno = 13 (0xd), region = 156 }

</bundles_post_ra>
